<compile_context>
chip_gen: v5e
topology: v5e:2x2
jax: 0.10.0
libtpu: 0.0.40
codegen_flags: <defaults>
</compile_context>

<pallas_src>
import functools

import numpy as np

import jax
import jax.numpy as jnp
from jax.experimental import pallas as pl
from jax.experimental.pallas import tpu as pltpu


# ----------------------------------------------------------------------------
# Small utilities: VMEM sizing, budgets, block/chunk selection, cached constants
# ----------------------------------------------------------------------------
def _vmem_block_bytes(shape, itemsize):
    """Approximate VMEM footprint of ONE buffer of `shape`, including the
    (sublane, lane) tile padding of the trailing two dims."""
    shape = tuple(int(d) for d in shape)
    if len(shape) == 1:
        shape = (1,) + shape
    sub_mult = max(8, 32 // itemsize)            # 8 for f32, 16 for bf16, 32 for int8
    lead = 1
    for d in shape[:-2]:
        lead *= d
    sub = -(-shape[-2] // sub_mult) * sub_mult
    lane = -(-shape[-1] // 128) * 128
    return lead * sub * lane * itemsize


def _tpu_budgets():
    """(per-data-block target bytes, total scoped-VMEM budget bytes).

    v5e/v6e have 128 MiB physical VMEM -> bigger blocks amortize the ~0.35us
    per-grid-step overhead; v7x has only 64 MiB per TensorCore -> stay modest
    and rely on >=2 grid steps so the 'parallel' batch axis shards over 2 TCs."""
    try:
        kind = jax.devices()[0].device_kind.lower()
    except Exception:  # no device info: be conservative
        kind = ""
    if "v7" in kind or "7x" in kind:
        return 4 << 20, 24 << 20
    if "v6" in kind or "v5" in kind or "v4" in kind:
        return 8 << 20, 40 << 20
    return 4 << 20, 24 << 20


def _pick_batch_block(batch, sample_shape, itemsize, *, sublane_mult, const_bytes,
                      total_budget, block_target, prefer_multi_step=True):
    """Largest batch block that (a) divides batch, (b) keeps 2x(in)+2x(out)
    buffers plus resident constants under `total_budget` and each data block
    under `block_target`, (c) respects dtype-aware sublane alignment when the
    batch dim is a tiled (second-to-last) dim, and (d) prefers >=2 grid steps
    (software pipelining / v7x megacore sharding)."""
    def blk_bytes(d):
        return _vmem_block_bytes((d,) + tuple(sample_shape), itemsize)

    def need(d):                    # double-buffered in + out, single-buffered consts
        return 4 * blk_bytes(d) + const_bytes

    divisors = [d for d in range(1, batch + 1) if batch % d == 0]
    if sublane_mult > 1:
        aligned = [d for d in divisors if d == batch or d % sublane_mult == 0]
    else:
        aligned = divisors
    if not aligned:
        aligned = [batch]
    fitting = [d for d in aligned
               if need(d) <= total_budget and blk_bytes(d) <= block_target]
    if not fitting:
        # Even the smallest aligned block exceeds the budget; vmem_limit_bytes
        # is sized from the block actually chosen, so at least request enough.
        # TODO(synk): split the lane axis across the grid for samples too large
        # to hold in VMEM at all.
        fitting = [min(aligned)]
    bb = max(fitting)
    if prefer_multi_step and batch // bb < 2:
        multi = [d for d in fitting if batch // d >= 2]
        if multi:
            bb = max(multi)
    return bb


def _pick_channel_chunk(C, HW, itemsize, max_const_bytes):
    """Channel-chunk size for the two-pass scale kernel: the smallest multiple
    of 128 dividing C (keeps both the gate block and the x chunk lane-dense)
    whose one-hot expansion fits the constant budget; falls back to the full
    channel count, else None."""
    for c_blk in range(128, C + 1, 128):
        if C % c_blk == 0 and _vmem_block_bytes((c_blk, c_blk * HW), itemsize) <= max_const_bytes:
            return c_blk
    if _vmem_block_bytes((C, C * HW), itemsize) <= max_const_bytes:
        return C
    return None


@functools.lru_cache(maxsize=None)
def _expand_matrix(g, hw, dtype):
    """One-hot gate expansion kron(I_g, 1_{1,hw}) -> (g, g*hw), built ONCE per
    (g, hw, dtype) and kept on device in the activation dtype (review item:
    do not rebuild / re-read this in f32 on every call)."""
    m = np.kron(np.eye(g, dtype=np.float32), np.ones((1, hw), dtype=np.float32))
    return jnp.asarray(m, dtype=dtype)


def _fold_pool_into_fc1(w1_t, hw):
    """W1_eff[c*hw + t, r] = W1[c, r] / hw, so x_flat @ W1_eff == mean_pool(x) @ W1."""
    return jnp.repeat(w1_t.astype(jnp.float32) / hw, hw, axis=0)


# --- single-buffering of grid-invariant operands (feature-probed once) -------
_CONST_PMODE_CACHE = []


def _const_pipeline_mode():
    """Return pl.Buffered(1) if this jax/libtpu build supports per-BlockSpec
    pipeline_mode (single-buffering a constant block saves VMEM: double
    buffering a grid-invariant operand is pure waste).  Otherwise None."""
    if _CONST_PMODE_CACHE:
        return _CONST_PMODE_CACHE[0]
    mode = None
    try:
        buffered = pl.Buffered(1)
        cspec = pl.BlockSpec((8, 128), lambda i: (0, 0), pipeline_mode=buffered)

        def _probe(c_ref, x_ref, o_ref):
            o_ref[...] = x_ref[...] + c_ref[...]

        xp = jnp.zeros((8, 128), jnp.float32)
        out = pl.pallas_call(
            _probe,
            out_shape=jax.ShapeDtypeStruct((8, 128), jnp.float32),
            grid_spec=pltpu.PrefetchScalarGridSpec(
                num_scalar_prefetch=0, grid=(1,),
                in_specs=[cspec, pl.BlockSpec((8, 128), lambda i: (0, 0))],
                out_specs=pl.BlockSpec((8, 128), lambda i: (0, 0))),
        )(xp, xp)
        jax.block_until_ready(out)
        mode = buffered
    except Exception:
        mode = None
    _CONST_PMODE_CACHE.append(mode)
    return mode


def _const_spec(shape):
    """BlockSpec for a grid-invariant operand: constant index_map, single
    buffered when the pipeline_mode knob is available."""
    zero = (0,) * len(shape)
    mode = _const_pipeline_mode()
    if mode is not None:
        return pl.BlockSpec(shape, lambda *_: zero, pipeline_mode=mode)
    return pl.BlockSpec(shape, lambda *_: zero)


def _compiler_params(vmem_need_bytes, dim_semantics):
    """Explicit scoped-VMEM limit derived from the actual need (review item),
    clamped to stay safe on v7x's 64 MiB physical VMEM."""
    limit = int(min(max(vmem_need_bytes + (4 << 20), 16 << 20), 48 << 20))
    return pltpu.CompilerParams(dimension_semantics=dim_semantics,
                                vmem_limit_bytes=limit)


# ----------------------------------------------------------------------------
# Kernels
# ----------------------------------------------------------------------------
def _se_fused_kernel(x_ref, w1e_ref, b1_ref, w2_ref, b2_ref, expand_ref, o_ref):
    """Single-pass, fully lane-dense SE.  x_ref/o_ref: (bb, C*HW), input dtype.

    The global-average-pool is folded into the FC1 weight, so squeeze+FC1 is one
    lane-dense MXU matmul; the per-channel gate is expanded back to the lane
    layout with a one-hot matmul (exact even in bf16: one term per output lane),
    so the final scale + store is an unmasked VPU multiply / wide vst."""
    f32 = jnp.float32
    x = x_ref[...]                                                      # (bb, N)
    h = jnp.dot(x, w1e_ref[...], preferred_element_type=f32) + b1_ref[...]
    h = jnp.maximum(h, 0.0)                                             # (bb, Cr) f32
    s = jax.nn.sigmoid(
        jnp.dot(h.astype(w2_ref.dtype), w2_ref[...],
                preferred_element_type=f32) + b2_ref[...])              # (bb, C) f32
    gate = jnp.dot(s.astype(x.dtype), expand_ref[...],
                   preferred_element_type=x.dtype)                      # (bb, N)
    o_ref[...] = (x * gate).astype(o_ref.dtype)


def _se_pool_gate_kernel(x_ref, w1_ref, b1_ref, w2_ref, b2_ref, s_ref):
    """Two-pass path, pass 1: pool + FC1/ReLU/FC2/sigmoid.
    x_ref: (bb, C, HW); s_ref: (bb, C) f32."""
    f32 = jnp.float32
    pooled = jnp.mean(x_ref[...].astype(f32), axis=-1)                  # (bb, C)
    h = jnp.maximum(
        jnp.dot(pooled, w1_ref[...], preferred_element_type=f32) + b1_ref[...], 0.0)
    s_ref[...] = jax.nn.sigmoid(
        jnp.dot(h, w2_ref[...], preferred_element_type=f32) + b2_ref[...])


def _se_scale_kernel(x_ref, s_ref, expand_ref, o_ref):
    """Two-pass path, pass 2: lane-dense per-channel scaling of one channel
    chunk.  x_ref/o_ref: (bb, c_blk*HW); s_ref: (bb, c_blk) f32;
    expand_ref: (c_blk, c_blk*HW) in the activation dtype."""
    x = x_ref[...]
    gate = jnp.dot(s_ref[...].astype(x.dtype), expand_ref[...],
                   preferred_element_type=x.dtype)
    o_ref[...] = (x * gate).astype(o_ref.dtype)


def _se_blocked_kernel(x_ref, w1_ref, b1_ref, w2_ref, b2_ref, o_ref):
    """Last-resort single-pass kernel with strictly bounded constants (lanes may
    be masked when HW % 128 != 0).  x_ref/o_ref: (bb, C, HW)."""
    f32 = jnp.float32
    x = x_ref[...]
    pooled = jnp.mean(x.astype(f32), axis=-1)
    h = jnp.maximum(
        jnp.dot(pooled, w1_ref[...], preferred_element_type=f32) + b1_ref[...], 0.0)
    s = jax.nn.sigmoid(
        jnp.dot(h, w2_ref[...], preferred_element_type=f32) + b2_ref[...])
    o_ref[...] = (x * s[:, :, None].astype(x.dtype)).astype(o_ref.dtype)


# ----------------------------------------------------------------------------
# Public wrapper
# ----------------------------------------------------------------------------
def se_layer(x_nchw, w1_t, b1, w2_t, b2, *, max_const_bytes=None):
    """SELayer.forward.  x_nchw: (B, C, H, W); w1_t: (C, C//r); b1: (1, C//r) or
    (C//r,); w2_t: (C//r, C); b2: (1, C) or (C,).  Returns (B, C, H, W)."""
    B, C, H, W = x_nchw.shape
    HW = H * W
    N = C * HW
    Cr = w1_t.shape[1]
    dt = x_nchw.dtype
    itemsize = dt.itemsize
    f32 = jnp.float32

    block_target, total_budget = _tpu_budgets()
    if max_const_bytes is None:
        # Keep fused-path constants well below scoped VMEM on every generation
        # (v5e review item: 3-4 MiB, not 8 MiB).
        max_const_bytes = min(4 << 20, total_budget // 4)
    sub_mult = max(8, 32 // itemsize)             # dtype-aware sublane alignment

    b1f = jnp.asarray(b1, dtype=f32).reshape(1, Cr)
    b2f = jnp.asarray(b2, dtype=f32).reshape(1, C)

    small_consts = (_vmem_block_bytes((Cr, C), itemsize)
                    + _vmem_block_bytes((1, Cr), 4)
                    + _vmem_block_bytes((1, C), 4))
    expand_full_bytes = _vmem_block_bytes((C, N), itemsize)
    w1e_bytes = _vmem_block_bytes((N, Cr), itemsize)

    # ------------------------------------------------------------------
    # Path 1: single-pass, fully lane-dense (constants fit VMEM comfortably).
    # ------------------------------------------------------------------
    if expand_full_bytes + w1e_bytes + small_consts <= max_const_bytes:
        const_bytes = expand_full_bytes + w1e_bytes + small_consts
        x2 = x_nchw.reshape(B, N)                       # free reshape, lanes = C*HW
        bb = _pick_batch_block(B, (N,), itemsize, sublane_mult=sub_mult,
                               const_bytes=const_bytes, total_budget=total_budget,
                               block_target=block_target)
        w1_eff = _fold_pool_into_fc1(w1_t, HW).astype(dt)       # (N, Cr)
        w2c = w2_t.astype(dt)                                   # (Cr, C)
        expand = _expand_matrix(C, HW, dt)                      # (C, N), cached
        vmem_need = 4 * _vmem_block_bytes((bb, N), itemsize) + const_bytes
        cost = pl.CostEstimate(
            flops=2 * B * (N * Cr + Cr * C + C * N),
            transcendentals=B * C,
            bytes_accessed=2 * B * N * itemsize + (C * N + N * Cr + Cr * C) * itemsize)
        out = pl.pallas_call(
            _se_fused_kernel,
            out_shape=jax.ShapeDtypeStruct((B, N), dt),
            grid_spec=pltpu.PrefetchScalarGridSpec(
                num_scalar_prefetch=0,
                grid=(B // bb,),
                in_specs=[
                    pl.BlockSpec((bb, N), lambda b: (b, 0)),    # x, lane-dense
                    _const_spec((N, Cr)),                       # pool folded into W1
                    _const_spec((1, Cr)),                       # b1 (f32)
                    _const_spec((Cr, C)),                       # W2^T
                    _const_spec((1, C)),                        # b2 (f32)
                    _const_spec((C, N)),                        # one-hot gate expansion
                ],
                out_specs=pl.BlockSpec((bb, N), lambda b: (b, 0)),
            ),
            compiler_params=_compiler_params(vmem_need, ("parallel",)),
            cost_estimate=cost,
        )(x2, w1_eff, b1f, w2c, b2f, expand)
        return out.reshape(B, C, H, W)

    # ------------------------------------------------------------------
    # Path 2: two-pass, lane-dense (real SE shapes, e.g. C=512 @ 7x7).
    #   Pass 1 reads x once and emits the (B, C) gates; pass 2 scales x in
    #   channel chunks of 128 so every load/store stays wide and unmasked.
    # ------------------------------------------------------------------
    c_blk = _pick_channel_chunk(C, HW, itemsize, max_const_bytes)
    if c_blk is not None:
        w1f = w1_t.astype(f32)
        w2f = w2_t.astype(f32)
        gate_consts = (_vmem_block_bytes((C, Cr), 4) + _vmem_block_bytes((Cr, C), 4)
                       + _vmem_block_bytes((1, Cr), 4) + _vmem_block_bytes((1, C), 4))

        # --- pass 1: gates ---
        x3 = x_nchw.reshape(B, C, HW)
        bb1 = _pick_batch_block(B, (C, HW), itemsize, sublane_mult=8,
                                const_bytes=gate_consts, total_budget=total_budget,
                                block_target=block_target)
        vmem_need1 = (4 * _vmem_block_bytes((bb1, C, HW), itemsize)
                      + 2 * _vmem_block_bytes((bb1, C), 4) + gate_consts)
        gates = pl.pallas_call(
            _se_pool_gate_kernel,
            out_shape=jax.ShapeDtypeStruct((B, C), jnp.float32),
            grid_spec=pltpu.PrefetchScalarGridSpec(
                num_scalar_prefetch=0,
                grid=(B // bb1,),
                in_specs=[
                    pl.BlockSpec((bb1, C, HW), lambda b: (b, 0, 0)),
                    _const_spec((C, Cr)),
                    _const_spec((1, Cr)),
                    _const_spec((Cr, C)),
                    _const_spec((1, C)),
                ],
                out_specs=pl.BlockSpec((bb1, C), lambda b: (b, 0)),
            ),
            compiler_params=_compiler_params(vmem_need1, ("parallel",)),
            cost_estimate=pl.CostEstimate(
                flops=2 * B * (N + C * Cr + Cr * C),
                transcendentals=B * C,
                bytes_accessed=B * N * itemsize + B * C * 4),
        )(x3, w1f, b1f, w2f, b2f)

        # --- pass 2: lane-dense chunked scaling ---
        CW = c_blk * HW
        expand_c = _expand_matrix(c_blk, HW, dt)                # (c_blk, CW), cached
        expand_bytes = _vmem_block_bytes((c_blk, CW), itemsize)
        bb2 = _pick_batch_block(B, (CW,), itemsize, sublane_mult=sub_mult,
                                const_bytes=expand_bytes, total_budget=total_budget,
                                block_target=block_target)
        vmem_need2 = (4 * _vmem_block_bytes((bb2, CW), itemsize)
                      + 2 * _vmem_block_bytes((bb2, c_blk), 4) + expand_bytes)
        x2 = x_nchw.reshape(B, N)
        out = pl.pallas_call(
            _se_scale_kernel,
            out_shape=jax.ShapeDtypeStruct((B, N), dt),
            grid_spec=pltpu.PrefetchScalarGridSpec(
                num_scalar_prefetch=0,
                grid=(B // bb2, C // c_blk),
                in_specs=[
                    pl.BlockSpec((bb2, CW), lambda b, c: (b, c)),      # x chunk
                    pl.BlockSpec((bb2, c_blk), lambda b, c: (b, c)),   # gate chunk
                    _const_spec((c_blk, CW)),                          # small one-hot
                ],
                out_specs=pl.BlockSpec((bb2, CW), lambda b, c: (b, c)),
            ),
            compiler_params=_compiler_params(vmem_need2, ("parallel", "parallel")),
            cost_estimate=pl.CostEstimate(
                flops=2 * B * N * c_blk + B * N,
                transcendentals=0,
                bytes_accessed=2 * B * N * itemsize + B * C * 4 + c_blk * CW * itemsize),
        )(x2, gates, expand_c)
        return out.reshape(B, C, H, W)

    # ------------------------------------------------------------------
    # Path 3: last resort with strictly bounded constants.
    # TODO(synk): small-C / very-large-HW shapes would be better served by a
    # per-channel grid with gates staged through SMEM so the scale pass stays
    # lane-dense; not needed for the shapes exercised here.
    # ------------------------------------------------------------------
    x3 = x_nchw.reshape(B, C, HW)
    w1f = w1_t.astype(f32)
    w2f = w2_t.astype(f32)
    gate_consts = (_vmem_block_bytes((C, Cr), 4) + _vmem_block_bytes((Cr, C), 4)
                   + _vmem_block_bytes((1, Cr), 4) + _vmem_block_bytes((1, C), 4))
    bb = _pick_batch_block(B, (C, HW), itemsize, sublane_mult=1,
                           const_bytes=gate_consts, total_budget=total_budget,
                           block_target=block_target)
    vmem_need = 4 * _vmem_block_bytes((bb, C, HW), itemsize) + gate_consts
    out = pl.pallas_call(
        _se_blocked_kernel,
        out_shape=jax.ShapeDtypeStruct((B, C, HW), dt),
        grid_spec=pltpu.PrefetchScalarGridSpec(
            num_scalar_prefetch=0,
            grid=(B // bb,),
            in_specs=[
                pl.BlockSpec((bb, C, HW), lambda b: (b, 0, 0)),
                _const_spec((C, Cr)),
                _const_spec((1, Cr)),
                _const_spec((Cr, C)),
                _const_spec((1, C)),
            ],
            out_specs=pl.BlockSpec((bb, C, HW), lambda b: (b, 0, 0)),
        ),
        compiler_params=_compiler_params(vmem_need, ("parallel",)),
    )(x3, w1f, b1f, w2f, b2f)
    return out.reshape(B, C, H, W)


# ----------------------------------------------------------------------------
# Pure-JAX reference (PyTorch SELayer.forward semantics, computed in f32)
# ----------------------------------------------------------------------------
def se_layer_ref(x, w1_t, b1, w2_t, b2):
    f32 = jnp.float32
    y = jnp.mean(x.astype(f32), axis=(2, 3))
    y = jnp.maximum(y @ w1_t.astype(f32) + jnp.asarray(b1, f32).reshape(1, -1), 0.0)
    y = jax.nn.sigmoid(y @ w2_t.astype(f32) + jnp.asarray(b2, f32).reshape(1, -1))
    return x.astype(f32) * y[:, :, None, None]


def _make_inputs(key, B, C, H, W, reduction, dtype=jnp.float32):
    Cr = max(C // reduction, 1)
    kx, kw1, kb1, kw2, kb2 = jax.random.split(key, 5)
    x = jax.random.normal(kx, (B, C, H, W), dtype=jnp.float32).astype(dtype)
    w1_t = jax.random.normal(kw1, (C, Cr), dtype=jnp.float32) * 0.1   # Linear(C, Cr).weight^T
    b1 = jax.random.normal(kb1, (1, Cr), dtype=jnp.float32) * 0.1
    w2_t = jax.random.normal(kw2, (Cr, C), dtype=jnp.float32) * 0.1   # Linear(Cr, C).weight^T
    b2 = jax.random.normal(kb2, (1, C), dtype=jnp.float32) * 0.1
    return x, w1_t, b1, w2_t, b2


if __name__ == "__main__":
    root = jax.random.PRNGKey(0)
    k_a, k_b = jax.random.split(root)

    # 1) Primary path: single-pass fused lane-dense kernel (f32), channel=32, r=16.
    B, C, H, W, red = 2, 32, 8, 8, 16
    x, w1_t, b1, w2_t, b2 = _make_inputs(k_a, B, C, H, W, red)
    out = jax.block_until_ready(se_layer(x, w1_t, b1, w2_t, b2))
    ref = se_layer_ref(x, w1_t, b1, w2_t, b2)
    assert out.shape == (B, C, H, W)
    assert jnp.allclose(out, ref, atol=1e-5, rtol=1e-5), "fused f32 mismatch"

    # 2) Same path with bf16 activations: gates are computed with f32 accumulation
    #    but applied in bf16, so tolerance reflects bf16 rounding (documented).
    xb = x.astype(jnp.bfloat16)
    outb = jax.block_until_ready(se_layer(xb, w1_t, b1, w2_t, b2))
    refb = se_layer_ref(xb, w1_t, b1, w2_t, b2)
    assert jnp.allclose(outb.astype(jnp.float32), refb, atol=5e-2, rtol=5e-2), \
        "fused bf16 mismatch"

    # 3) Two-pass (gate kernel + lane-dense chunked scale kernel) path, forced via
    #    a small constant budget -- the path real SE shapes (e.g. C=512 @ 7x7) take.
    B2, C2, H2, W2 = 4, 256, 2, 2
    x2, w1b, b1b, w2b, b2b = _make_inputs(k_b, B2, C2, H2, W2, red)
    out2 = jax.block_until_ready(
        se_layer(x2, w1b, b1b, w2b, b2b, max_const_bytes=1 << 19))
    ref2 = se_layer_ref(x2, w1b, b1b, w2b, b2b)
    assert out2.shape == (B2, C2, H2, W2)
    assert jnp.allclose(out2, ref2, atol=1e-5, rtol=1e-5), "two-pass mismatch"

    print("KERNEL_OK")
</pallas_src>

<mosaic_0001>
module attributes {stable_mosaic.version = 11 : i64} {
  func.func @_probe(%arg0: i32, %arg1: memref<8x128xf32, #tpu.memory_space<vmem>>, %arg2: memref<8x128xf32, #tpu.memory_space<vmem>>, %arg3: memref<8x128xf32, #tpu.memory_space<vmem>>) attributes {dimension_semantics = [#tpu.dimension_semantics<arbitrary>], iteration_bounds = array<i64: 1>, scalar_prefetch = 0 : i64, scratch_operands = 0 : i64, tpu.core_type = #tpu.core_type<tc>, window_params = [{pipeline_mode = #tpu.pipeline_mode<synchronous>, transform_indices = @transform_0, window_bounds = array<i64: 8, 128>}, {pipeline_mode = #tpu.pipeline_mode<synchronous>, transform_indices = @transform_1, window_bounds = array<i64: 8, 128>}, {pipeline_mode = #tpu.pipeline_mode<synchronous>, transform_indices = @transform_2, window_bounds = array<i64: 8, 128>}]} {
    %c0 = arith.constant 0 : index
    %c0_0 = arith.constant 0 : index
    %0 = vector.load %arg2[%c0, %c0_0] : memref<8x128xf32, #tpu.memory_space<vmem>>, vector<8x128xf32>
    %c0_1 = arith.constant 0 : index
    %c0_2 = arith.constant 0 : index
    %1 = vector.load %arg1[%c0_1, %c0_2] : memref<8x128xf32, #tpu.memory_space<vmem>>, vector<8x128xf32>
    %2 = arith.addf %0, %1 : vector<8x128xf32>
    %c0_3 = arith.constant 0 : index
    %c0_4 = arith.constant 0 : index
    %3 = vector.load %arg3[%c0_3, %c0_4] : memref<8x128xf32, #tpu.memory_space<vmem>>, vector<8x128xf32>
    tpu.vector_store %arg3[%c0_3, %c0_4], %2 {strides = array<i32>} : memref<8x128xf32, #tpu.memory_space<vmem>>, vector<8x128xf32>,
    return
  }
  func.func @transform_0(%arg0: i32) -> (i32, i32) {
    %c0_i32 = arith.constant 0 : i32
    %c0_i32_0 = arith.constant 0 : i32
    %c0_i32_1 = arith.constant 0 : i32
    return %c0_i32, %c0_i32_0 : i32, i32
  }
  func.func @transform_1(%arg0: i32) -> (i32, i32) {
    %c0_i32 = arith.constant 0 : i32
    %c0_i32_0 = arith.constant 0 : i32
    %c0_i32_1 = arith.constant 0 : i32
    return %c0_i32, %c0_i32_0 : i32, i32
  }
  func.func @transform_2(%arg0: i32) -> (i32, i32) {
    %c0_i32 = arith.constant 0 : i32
    %c0_i32_0 = arith.constant 0 : i32
    %c0_i32_1 = arith.constant 0 : i32
    return %c0_i32, %c0_i32_0 : i32, i32
  }
}

module attributes {stable_mosaic.version = 11 : i64} {
  func.func @_se_fused_kernel(%arg0: i32, %arg1: memref<2x2048xf32, #tpu.memory_space<vmem>>, %arg2: memref<2048x2xf32, #tpu.memory_space<vmem>>, %arg3: memref<1x2xf32, #tpu.memory_space<vmem>>, %arg4: memref<2x32xf32, #tpu.memory_space<vmem>>, %arg5: memref<1x32xf32, #tpu.memory_space<vmem>>, %arg6: memref<32x2048xf32, #tpu.memory_space<vmem>>, %arg7: memref<2x2048xf32, #tpu.memory_space<vmem>>) attributes {dimension_semantics = [#tpu.dimension_semantics<parallel>], iteration_bounds = array<i64: 1>, scalar_prefetch = 0 : i64, scratch_operands = 0 : i64, tpu.core_type = #tpu.core_type<tc>, window_params = [{transform_indices = @transform_0, window_bounds = array<i64: 2, 2048>}, {pipeline_mode = #tpu.pipeline_mode<synchronous>, transform_indices = @transform_1, window_bounds = array<i64: 2048, 2>}, {pipeline_mode = #tpu.pipeline_mode<synchronous>, transform_indices = @transform_2, window_bounds = array<i64: 1, 2>}, {pipeline_mode = #tpu.pipeline_mode<synchronous>, transform_indices = @transform_3, window_bounds = array<i64: 2, 32>}, {pipeline_mode = #tpu.pipeline_mode<synchronous>, transform_indices = @transform_4, window_bounds = array<i64: 1, 32>}, {pipeline_mode = #tpu.pipeline_mode<synchronous>, transform_indices = @transform_5, window_bounds = array<i64: 32, 2048>}, {transform_indices = @transform_6, window_bounds = array<i64: 2, 2048>}]} {
    %c0 = arith.constant 0 : index
    %c0_0 = arith.constant 0 : index
    %0 = vector.load %arg1[%c0, %c0_0] : memref<2x2048xf32, #tpu.memory_space<vmem>>, vector<2x2048xf32>
    %c0_1 = arith.constant 0 : index
    %c0_2 = arith.constant 0 : index
    %1 = vector.load %arg2[%c0_1, %c0_2] : memref<2048x2xf32, #tpu.memory_space<vmem>>, vector<2048x2xf32>
    %cst = arith.constant dense<0.000000e+00> : vector<2x2xf32>
    %2 = tpu.matmul %0, %1, %cst {dimension_numbers = #tpu.dot_dimension_numbers<[1], [0], [0], [1], [0, 0, 1, 1], [], []>} : vector<2x2048xf32>, vector<2048x2xf32>, vector<2x2xf32> -> vector<2x2xf32>
    %c0_3 = arith.constant 0 : index
    %c0_4 = arith.constant 0 : index
    %3 = vector.load %arg3[%c0_3, %c0_4] : memref<1x2xf32, #tpu.memory_space<vmem>>, vector<1x2xf32>
    %4 = vector.broadcast %3 : vector<1x2xf32> to vector<2x2xf32>
    %5 = arith.addf %2, %4 : vector<2x2xf32>
    %cst_5 = arith.constant 0.000000e+00 : f32
    %6 = vector.broadcast %cst_5 : f32 to vector<2x2xf32>
    %7 = arith.maximumf %5, %6 : vector<2x2xf32>
    %c0_6 = arith.constant 0 : index
    %c0_7 = arith.constant 0 : index
    %8 = vector.load %arg4[%c0_6, %c0_7] : memref<2x32xf32, #tpu.memory_space<vmem>>, vector<2x32xf32>
    %cst_8 = arith.constant dense<0.000000e+00> : vector<2x32xf32>
    %9 = tpu.matmul %7, %8, %cst_8 {dimension_numbers = #tpu.dot_dimension_numbers<[1], [0], [0], [1], [0, 0, 1, 1], [], []>} : vector<2x2xf32>, vector<2x32xf32>, vector<2x32xf32> -> vector<2x32xf32>
    %c0_9 = arith.constant 0 : index
    %c0_10 = arith.constant 0 : index
    %10 = vector.load %arg5[%c0_9, %c0_10] : memref<1x32xf32, #tpu.memory_space<vmem>>, vector<1x32xf32>
    %11 = vector.broadcast %10 : vector<1x32xf32> to vector<2x32xf32>
    %12 = arith.addf %9, %11 : vector<2x32xf32>
    %13 = arith.negf %12 : vector<2x32xf32>
    %14 = math.exp %13 : vector<2x32xf32>
    %cst_11 = arith.constant 1.000000e+00 : f32
    %15 = vector.broadcast %cst_11 : f32 to vector<2x32xf32>
    %16 = arith.addf %15, %14 : vector<2x32xf32>
    %17 = arith.divf %15, %16 : vector<2x32xf32>
    %c0_12 = arith.constant 0 : index
    %c0_13 = arith.constant 0 : index
    %18 = vector.load %arg6[%c0_12, %c0_13] : memref<32x2048xf32, #tpu.memory_space<vmem>>, vector<32x2048xf32>
    %cst_14 = arith.constant dense<0.000000e+00> : vector<2x2048xf32>
    %19 = tpu.matmul %17, %18, %cst_14 {dimension_numbers = #tpu.dot_dimension_numbers<[1], [0], [0], [1], [0, 0, 1, 1], [], []>} : vector<2x32xf32>, vector<32x2048xf32>, vector<2x2048xf32> -> vector<2x2048xf32>
    %20 = arith.mulf %0, %19 : vector<2x2048xf32>
    %c0_15 = arith.constant 0 : index
    %c0_16 = arith.constant 0 : index
    %21 = vector.load %arg7[%c0_15, %c0_16] : memref<2x2048xf32, #tpu.memory_space<vmem>>, vector<2x2048xf32>
    tpu.vector_store %arg7[%c0_15, %c0_16], %20 {strides = array<i32>} : memref<2x2048xf32, #tpu.memory_space<vmem>>, vector<2x2048xf32>,
    return
  }
  func.func @transform_0(%arg0: i32) -> (i32, i32) {
    %c0_i32 = arith.constant 0 : i32
    %c0_i32_0 = arith.constant 0 : i32
    return %arg0, %c0_i32 : i32, i32
  }
  func.func @transform_1(%arg0: i32) -> (i32, i32) {
    %c0_i32 = arith.constant 0 : i32
    %c0_i32_0 = arith.constant 0 : i32
    %c0_i32_1 = arith.constant 0 : i32
    return %c0_i32, %c0_i32_0 : i32, i32
  }
  func.func @transform_2(%arg0: i32) -> (i32, i32) {
    %c0_i32 = arith.constant 0 : i32
    %c0_i32_0 = arith.constant 0 : i32
    %c0_i32_1 = arith.constant 0 : i32
    return %c0_i32, %c0_i32_0 : i32, i32
  }
  func.func @transform_3(%arg0: i32) -> (i32, i32) {
    %c0_i32 = arith.constant 0 : i32
    %c0_i32_0 = arith.constant 0 : i32
    %c0_i32_1 = arith.constant 0 : i32
    return %c0_i32, %c0_i32_0 : i32, i32
  }
  func.func @transform_4(%arg0: i32) -> (i32, i32) {
    %c0_i32 = arith.constant 0 : i32
    %c0_i32_0 = arith.constant 0 : i32
    %c0_i32_1 = arith.constant 0 : i32
    return %c0_i32, %c0_i32_0 : i32, i32
  }
  func.func @transform_5(%arg0: i32) -> (i32, i32) {
    %c0_i32 = arith.constant 0 : i32
    %c0_i32_0 = arith.constant 0 : i32
    %c0_i32_1 = arith.constant 0 : i32
    return %c0_i32, %c0_i32_0 : i32, i32
  }
  func.func @transform_6(%arg0: i32) -> (i32, i32) {
    %c0_i32 = arith.constant 0 : i32
    %c0_i32_0 = arith.constant 0 : i32
    return %arg0, %c0_i32 : i32, i32
  }
}

</mosaic_0001>

<bundles_post_ra>
// kernel: tpu_custom_call.1
= control target key start
LH: loop header
LB: loop body
LE: loop exit
PB: predicated region body
PF: predicated region fallthrough
CT: control target
= control target key end

     0   :  { %7 = vsyncpa [#allocation3], 0  ;;  %s170_s0 = inlined_call_operand.hbm [shape: f32[8,128], index: 0, kind: input, shape index: {}]   ;;  %s171_s1 = inlined_call_operand.hbm [shape: f32[8,128], index: 1, kind: input, shape index: {}]   ;;  %s172_s2 = inlined_call_operand.hbm [shape: f32[8,128], index: 2, kind: output, shape index: {}]  }
   0x1   :  { %8 = vsyncpa [#allocation6], 0 }
   0x2   :  { %9 = vsyncpa [#allocation4], 0  ;;  %s15_s11 = sshll.u32 %s170_s0, 4  ;;  %s143_s12 = smov [#allocation2]   ;;  %s16_s11 = int_to_ptr.hbm [resolvable:$true] %s15_s11 }
   0x3   :  { %s17_s13 = sshll.u32 %s143_s12, 4  ;;  %s26_s16 = sshll.u32 %s171_s1, 4  ;;  %s18_s13 = int_to_ptr.vmem [resolvable:$true] %s17_s13  ;;  %s27_s16 = int_to_ptr.hbm [resolvable:$true] %s26_s16 }
   0x4   :  { %20 = dma.hbm_to_vmem [thread:$0]  %s16_s11, 128, %s18_s13, [#allocation3]  }
   0x5   :  { %s144_s17 = smov [#allocation5]  }
   0x6   :  { %s28_s18 = sshll.u32 %s144_s17, 4  ;;  %s29_s18 = int_to_ptr.vmem [resolvable:$true] %s28_s18 }
   0x7   :  { %31 = dma.hbm_to_vmem [thread:$0]  %s27_s16, 128, %s29_s18, [#allocation6]  }
   0x8   :  { %137 = dma.done.wait [#allocation3], 128  }
   0x9   :  { %138 = vsyncadd [#allocation3], 4294967168 }
   0xa   :  { %139 = dma.done.wait [#allocation6], 128  }
   0xb   :  { %140 = vsyncadd [#allocation6], 4294967168  ;;  %s145_s19 = smov [#allocation7]   ;;  %s51_s22 = sshll.u32 %s172_s2, 4  ;;  %v40_v0 = vld [vmem:[#allocation5] sm:$0xff]  ;;  %v41_v1 = vld [vmem:[#allocation2] sm:$0xff]  ;;  %s52_s22 = int_to_ptr.hbm [resolvable:$true] %s51_s22 }
   0xc   :  { %s49_s0 = sshll.u32 %s145_s19, 4  ;;  %v42_v2 = vadd.f32 %v41_v1, %v40_v0  ;;  %s50_s0 = int_to_ptr.vmem [resolvable:$true] %s49_s0 }
   0xe   :  { %43 = vst [vmem:[#allocation7] sm:$0xff] %v42_v2 }
   0xf   :  { %54 = dma.vmem_to_hbm [thread:$0]  %s50_s0, 128, %s52_s22, [#allocation4]  }
  0x10   :  { %141 = dma.done.wait [#allocation4], 128  }
  0x11   :  { %142 = vsyncadd [#allocation4], 4294967168 }
  0x12   :  { %59 = vsyncpa [#allocation3], 1 }
  0x13   :  { %60 = vsyncpa [#allocation6], 1 }
  0x14   :  { %61 = vsyncpa [#allocation4], 1 }

// kernel: tpu_custom_call.1
= control target key start
LH: loop header
LB: loop body
LE: loop exit
PB: predicated region body
PF: predicated region fallthrough
CT: control target
= control target key end

     0   :  { %s2313_s0 = inlined_call_operand.vmem [shape: f32[2,2048], index: 0, kind: input, shape index: {}]   ;;  %s2314_s1 = inlined_call_operand.vmem [shape: f32[2048,2], index: 1, kind: input, shape index: {}]   ;;  %s2315_s2 = inlined_call_operand.vmem [shape: f32[1,2], index: 2, kind: input, shape index: {}]   ;;  %s2316_s3 = inlined_call_operand.vmem [shape: f32[2,32], index: 3, kind: input, shape index: {}]   ;;  %s2317_s4 = inlined_call_operand.vmem [shape: f32[1,32], index: 4, kind: input, shape index: {}]   ;;  %s2318_s5 = inlined_call_operand.vmem [shape: f32[32,2048], index: 5, kind: input, shape index: {}]   ;;  %s2319_s6 = inlined_call_operand.hbm [shape: f32[2,2048], index: 6, kind: output, shape index: {}]  }
   0x1   :  { %v43_v0 = vld [vmem:[%s2314_s1 + $0x78] sm:$0xff]  ;;  %v42_v2 = vld [vmem:[%s2314_s1 + $0x70] sm:$0xff]  ;;  %v41_v6 = vld [vmem:[%s2314_s1 + $0x68] sm:$0xff] }
   0x2   :  { %v75_v1 = vld [vmem:[%s2314_s1 + $0x178] sm:$0xff]  ;;  %329 = vmatpush.msra.mxu0 %v43_v0  ;;  %v74_v4 = vld [vmem:[%s2314_s1 + $0x170] sm:$0xff]  ;;  %v73_v8 = vld [vmem:[%s2314_s1 + $0x168] sm:$0xff] }
   0x3   :  { %369 = vmatpush.msra.mxu2 %v75_v1  ;;  %v59_v3 = vld [vmem:[%s2314_s1 + $0xf8] sm:$0xff]  ;;  %v58_v7 = vld [vmem:[%s2314_s1 + $0xf0] sm:$0xff]  ;;  %v57_v10 = vld [vmem:[%s2314_s1 + $0xe8] sm:$0xff] }
   0x4   :  { %v91_v5 = vld [vmem:[%s2314_s1 + $0x1f8] sm:$0xff]  ;;  %349 = vmatpush.msra.mxu1 %v59_v3  ;;  %330 = vmatpush.msra.mxu0 %v42_v2  ;;  %v90_v9 = vld [vmem:[%s2314_s1 + $0x1f0] sm:$0xff]  ;;  %v40_v11 = vld [vmem:[%s2314_s1 + $0x60] sm:$0xff] }
   0x5   :  { %389 = vmatpush.msra.mxu3 %v91_v5  ;;  %370 = vmatpush.msra.mxu2 %v74_v4  ;;  %v72_v12 = vld [vmem:[%s2314_s1 + $0x160] sm:$0xff]  ;;  %v89_v13 = vld [vmem:[%s2314_s1 + $0x1e8] sm:$0xff]  ;;  %v39_v16 = vld [vmem:[%s2314_s1 + $0x58] sm:$0xff] }
   0x6   :  { %350 = vmatpush.msra.mxu1 %v58_v7  ;;  %331 = vmatpush.msra.mxu0 %v41_v6  ;;  %v56_v14 = vld [vmem:[%s2314_s1 + $0xe0] sm:$0xff]  ;;  %v71_v17 = vld [vmem:[%s2314_s1 + $0x158] sm:$0xff]  ;;  %v38_v20 = vld [vmem:[%s2314_s1 + $0x50] sm:$0xff] }
   0x7   :  { %390 = vmatpush.msra.mxu3 %v90_v9  ;;  %371 = vmatpush.msra.mxu2 %v73_v8  ;;  %v88_v15 = vld [vmem:[%s2314_s1 + $0x1e0] sm:$0xff]  ;;  %v55_v18 = vld [vmem:[%s2314_s1 + $0xd8] sm:$0xff]  ;;  %v70_v21 = vld [vmem:[%s2314_s1 + $0x150] sm:$0xff] }
   0x8   :  { %351 = vmatpush.msra.mxu1 %v57_v10  ;;  %332 = vmatpush.msra.mxu0 %v40_v11  ;;  %v87_v19 = vld [vmem:[%s2314_s1 + $0x1d8] sm:$0xff]  ;;  %v54_v22 = vld [vmem:[%s2314_s1 + $0xd0] sm:$0xff]  ;;  %v37_v24 = vld [vmem:[%s2314_s1 + $0x48] sm:$0xff] }
   0x9   :  { %391 = vmatpush.msra.mxu3 %v89_v13  ;;  %372 = vmatpush.msra.mxu2 %v72_v12  ;;  %v86_v23 = vld [vmem:[%s2314_s1 + $0x1d0] sm:$0xff]  ;;  %v69_v25 = vld [vmem:[%s2314_s1 + $0x148] sm:$0xff]  ;;  %v36_v28 = vld [vmem:[%s2314_s1 + $0x40] sm:$0xff] }
   0xa   :  { %352 = vmatpush.msra.mxu1 %v56_v14  ;;  %333 = vmatpush.msra.mxu0 %v39_v16  ;;  %v53_v26 = vld [vmem:[%s2314_s1 + $0xc8] sm:$0xff]  ;;  %v68_v29 = vld [vmem:[%s2314_s1 + $0x140] sm:$0xff]  ;;  %v35_v32 = vld [vmem:[%s2314_s1 + $0x38] sm:$0xff] }
   0xb   :  { %392 = vmatpush.msra.mxu3 %v88_v15  ;;  %373 = vmatpush.msra.mxu2 %v71_v17  ;;  %v85_v27 = vld [vmem:[%s2314_s1 + $0x1c8] sm:$0xff]  ;;  %v52_v30 = vld [vmem:[%s2314_s1 + $0xc0] sm:$0xff]  ;;  %v67_v33 = vld [vmem:[%s2314_s1 + $0x138] sm:$0xff] }
   0xc   :  { %353 = vmatpush.msra.mxu1 %v55_v18  ;;  %334 = vmatpush.msra.mxu0 %v38_v20  ;;  %v84_v31 = vld [vmem:[%s2314_s1 + $0x1c0] sm:$0xff]  ;;  %v51_v34 = vld [vmem:[%s2314_s1 + $0xb8] sm:$0xff]  ;;  %v34_v36 = vld [vmem:[%s2314_s1 + $0x30] sm:$0xff] }
   0xd   :  { %393 = vmatpush.msra.mxu3 %v87_v19  ;;  %374 = vmatpush.msra.mxu2 %v70_v21  ;;  %v83_v35 = vld [vmem:[%s2314_s1 + $0x1b8] sm:$0xff]  ;;  %v66_v37 = vld [vmem:[%s2314_s1 + $0x130] sm:$0xff]  ;;  %v33_v40 = vld [vmem:[%s2314_s1 + $0x28] sm:$0xff] }
   0xe   :  { %354 = vmatpush.msra.mxu1 %v54_v22  ;;  %335 = vmatpush.msra.mxu0 %v37_v24  ;;  %v50_v38 = vld [vmem:[%s2314_s1 + $0xb0] sm:$0xff]  ;;  %v65_v41 = vld [vmem:[%s2314_s1 + $0x128] sm:$0xff]  ;;  %v32_v44 = vld [vmem:[%s2314_s1 + $0x20] sm:$0xff] }
   0xf   :  { %394 = vmatpush.msra.mxu3 %v86_v23  ;;  %375 = vmatpush.msra.mxu2 %v69_v25  ;;  %v82_v39 = vld [vmem:[%s2314_s1 + $0x1b0] sm:$0xff]  ;;  %v49_v42 = vld [vmem:[%s2314_s1 + $0xa8] sm:$0xff]  ;;  %v64_v45 = vld [vmem:[%s2314_s1 + $0x120] sm:$0xff] }
  0x10   :  { %355 = vmatpush.msra.mxu1 %v53_v26  ;;  %336 = vmatpush.msra.mxu0 %v36_v28  ;;  %v81_v43 = vld [vmem:[%s2314_s1 + $0x1a8] sm:$0xff]  ;;  %v48_v46 = vld [vmem:[%s2314_s1 + $0xa0] sm:$0xff]  ;;  %v31_v48 = vld [vmem:[%s2314_s1 + $0x18] sm:$0xff] }
  0x11   :  { %395 = vmatpush.msra.mxu3 %v85_v27  ;;  %376 = vmatpush.msra.mxu2 %v68_v29  ;;  %v80_v47 = vld [vmem:[%s2314_s1 + $0x1a0] sm:$0xff]  ;;  %v63_v49 = vld [vmem:[%s2314_s1 + $0x118] sm:$0xff]  ;;  %v30_v52 = vld [vmem:[%s2314_s1 + $0x10] sm:$0xff] }
  0x12   :  { %356 = vmatpush.msra.mxu1 %v52_v30  ;;  %337 = vmatpush.msra.mxu0 %v35_v32  ;;  %v47_v50 = vld [vmem:[%s2314_s1 + $0x98] sm:$0xff]  ;;  %v62_v53 = vld [vmem:[%s2314_s1 + $0x110] sm:$0xff]  ;;  %v29_v56 = vld [vmem:[%s2314_s1 + $0x8] sm:$0xff] }
  0x13   :  { %396 = vmatpush.msra.mxu3 %v84_v31  ;;  %377 = vmatpush.msra.mxu2 %v67_v33  ;;  %v79_v51 = vld [vmem:[%s2314_s1 + $0x198] sm:$0xff]  ;;  %v46_v54 = vld [vmem:[%s2314_s1 + $0x90] sm:$0xff]  ;;  %v61_v57 = vld [vmem:[%s2314_s1 + $0x108] sm:$0xff] }
  0x14   :  { %357 = vmatpush.msra.mxu1 %v51_v34  ;;  %338 = vmatpush.msra.mxu0 %v34_v36  ;;  %v78_v55 = vld [vmem:[%s2314_s1 + $0x190] sm:$0xff]  ;;  %v45_v58 = vld [vmem:[%s2314_s1 + $0x88] sm:$0xff]  ;;  %v28_v60 = vld [vmem:[%s2314_s1] sm:$0xff] }
  0x15   :  { %397 = vmatpush.msra.mxu3 %v83_v35  ;;  %378 = vmatpush.msra.mxu2 %v66_v37  ;;  %v77_v59 = vld [vmem:[%s2314_s1 + $0x188] sm:$0xff]  ;;  %v60_v61 = vld [vmem:[%s2314_s1 + $0x100] sm:$0xff]  ;;  %v107_v62 = vld [vmem:[%s2314_s1 + $0x278] sm:$0xff] }
  0x16   :  { %358 = vmatpush.msra.mxu1 %v50_v38  ;;  %339 = vmatpush.msra.mxu0 %v33_v40  ;;  %v139_v63 = vld [vmem:[%s2314_s1 + $0x378] sm:$0xff]  ;;  %v44_v0 = vld [vmem:[%s2314_s1 + $0x80] sm:$0xff]  ;;  %v106_v2 = vld [vmem:[%s2314_s1 + $0x270] sm:$0xff] }
  0x17   :  { %398 = vmatpush.msra.mxu3 %v82_v39  ;;  %379 = vmatpush.msra.mxu2 %v65_v41  ;;  %v76_v1 = vld [vmem:[%s2314_s1 + $0x180] sm:$0xff]  ;;  %v123_v3 = vld [vmem:[%s2314_s1 + $0x2f8] sm:$0xff]  ;;  %v138_v4 = vld [vmem:[%s2314_s1 + $0x370] sm:$0xff] }
  0x18   :  { %359 = vmatpush.msra.mxu1 %v49_v42  ;;  %340 = vmatpush.msra.mxu0 %v32_v44  ;;  %v155_v5 = vld [vmem:[%s2314_s1 + $0x3f8] sm:$0xff]  ;;  %v105_v6 = vld [vmem:[%s2314_s1 + $0x268] sm:$0xff]  ;;  %v122_v7 = vld [vmem:[%s2314_s1 + $0x2f0] sm:$0xff] }
  0x19   :  { %399 = vmatpush.msra.mxu3 %v81_v43  ;;  %380 = vmatpush.msra.mxu2 %v64_v45  ;;  %v137_v8 = vld [vmem:[%s2314_s1 + $0x368] sm:$0xff]  ;;  %v154_v9 = vld [vmem:[%s2314_s1 + $0x3f0] sm:$0xff]  ;;  %v104_v10 = vld [vmem:[%s2314_s1 + $0x260] sm:$0xff] }
  0x1a   :  { %360 = vmatpush.msra.mxu1 %v48_v46  ;;  %341 = vmatpush.msra.mxu0 %v31_v48  ;;  %v121_v11 = vld [vmem:[%s2314_s1 + $0x2e8] sm:$0xff]  ;;  %v136_v12 = vld [vmem:[%s2314_s1 + $0x360] sm:$0xff]  ;;  %v103_v14 = vld [vmem:[%s2314_s1 + $0x258] sm:$0xff] }
  0x1b   :  { %400 = vmatpush.msra.mxu3 %v80_v47  ;;  %381 = vmatpush.msra.mxu2 %v63_v49  ;;  %v153_v13 = vld [vmem:[%s2314_s1 + $0x3e8] sm:$0xff]  ;;  %v120_v15 = vld [vmem:[%s2314_s1 + $0x2e0] sm:$0xff]  ;;  %v135_v16 = vld [vmem:[%s2314_s1 + $0x358] sm:$0xff] }
  0x1c   :  { %361 = vmatpush.msra.mxu1 %v47_v50  ;;  %342 = vmatpush.msra.mxu0 %v30_v52  ;;  %v152_v17 = vld [vmem:[%s2314_s1 + $0x3e0] sm:$0xff]  ;;  %v102_v18 = vld [vmem:[%s2314_s1 + $0x250] sm:$0xff]  ;;  %v119_v19 = vld [vmem:[%s2314_s1 + $0x2d8] sm:$0xff] }
  0x1d   :  { %401 = vmatpush.msra.mxu3 %v79_v51  ;;  %382 = vmatpush.msra.mxu2 %v62_v53  ;;  %v134_v20 = vld [vmem:[%s2314_s1 + $0x350] sm:$0xff]  ;;  %v151_v21 = vld [vmem:[%s2314_s1 + $0x3d8] sm:$0xff]  ;;  %v101_v22 = vld [vmem:[%s2314_s1 + $0x248] sm:$0xff] }
  0x1e   :  { %362 = vmatpush.msra.mxu1 %v46_v54  ;;  %343 = vmatpush.msra.mxu0 %v29_v56  ;;  %v118_v23 = vld [vmem:[%s2314_s1 + $0x2d0] sm:$0xff]  ;;  %v133_v24 = vld [vmem:[%s2314_s1 + $0x348] sm:$0xff]  ;;  %v1521_v26 = vld [vmem:[%s2313_s0] sm:$0xff] }
  0x1f   :  { %402 = vmatpush.msra.mxu3 %v78_v55  ;;  %383 = vmatpush.msra.mxu2 %v61_v57  ;;  %v150_v25 = vld [vmem:[%s2314_s1 + $0x3d0] sm:$0xff]  ;;  %v100_v27 = vld [vmem:[%s2314_s1 + $0x240] sm:$0xff]  ;;  %v117_v28 = vld [vmem:[%s2314_s1 + $0x2c8] sm:$0xff]  ;;  %292 = vst [vmem:[#allocation1] ss:$4 sm:$0xff] %v1521_v26 }
  0x20   :  { %363 = vmatpush.msra.mxu1 %v45_v58  ;;  %344 = vmatpush.msra.mxu0 %v28_v60  ;;  %v132_v29 = vld [vmem:[%s2314_s1 + $0x340] sm:$0xff]  ;;  %v149_v30 = vld [vmem:[%s2314_s1 + $0x3c8] sm:$0xff]  ;;  %v99_v31 = vld [vmem:[%s2314_s1 + $0x238] sm:$0xff] }
  0x21   :  { %403 = vmatpush.msra.mxu3 %v77_v59  ;;  %384 = vmatpush.msra.mxu2 %v60_v61  ;;  %v116_v32 = vld [vmem:[%s2314_s1 + $0x2c0] sm:$0xff]  ;;  %v131_v33 = vld [vmem:[%s2314_s1 + $0x338] sm:$0xff]  ;;  %v98_v35 = vld [vmem:[%s2314_s1 + $0x230] sm:$0xff] }
  0x22   :  { %409 = vmatpush.msrb.mxu0 %v107_v62  ;;  %364 = vmatpush.msra.mxu1 %v44_v0  ;;  %v148_v34 = vld [vmem:[%s2314_s1 + $0x3c0] sm:$0xff]  ;;  %v115_v36 = vld [vmem:[%s2314_s1 + $0x2b8] sm:$0xff]  ;;  %v130_v37 = vld [vmem:[%s2314_s1 + $0x330] sm:$0xff] }
  0x23   :  { %449 = vmatpush.msrb.mxu2 %v139_v63  ;;  %404 = vmatpush.msra.mxu3 %v76_v1  ;;  %v147_v38 = vld [vmem:[%s2314_s1 + $0x3b8] sm:$0xff]  ;;  %v97_v39 = vld [vmem:[%s2314_s1 + $0x228] sm:$0xff]  ;;  %v114_v40 = vld [vmem:[%s2314_s1 + $0x2b0] sm:$0xff] }
  0x24   :  { %410 = vmatpush.msrb.mxu0 %v106_v2  ;;  %429 = vmatpush.msrb.mxu1 %v123_v3  ;;  %v129_v41 = vld [vmem:[%s2314_s1 + $0x328] sm:$0xff]  ;;  %v146_v42 = vld [vmem:[%s2314_s1 + $0x3b0] sm:$0xff]  ;;  %v96_v44 = vld [vmem:[%s2314_s1 + $0x220] sm:$0xff] }
  0x25   :  { %450 = vmatpush.msrb.mxu2 %v138_v4  ;;  %469 = vmatpush.msrb.mxu3 %v155_v5  ;;  %v1575_v43 = vld [vmem:[%s2313_s0 + $0x8] sm:$0xff]  ;;  %v1586_v46 = vld [vmem:[%s2313_s0 + $0x10] sm:$0xff]  ;;  %v128_v47 = vld [vmem:[%s2314_s1 + $0x320] sm:$0xff] }
  0x26   :  { %411 = vmatpush.msrb.mxu0 %v105_v6  ;;  %430 = vmatpush.msrb.mxu1 %v122_v7  ;;  %v113_v45 = vld [vmem:[%s2314_s1 + $0x2a8] sm:$0xff]  ;;  %294 = vst [vmem:[#allocation1 + $0x20] ss:$4 sm:$0xff] %v1575_v43  ;;  %v295_v48 = vld.sshfl [vmem:[#allocation1] sm:$0xff pattern:$0x73625140] }
  0x27   :  { %451 = vmatpush.msrb.mxu2 %v137_v8  ;;  %470 = vmatpush.msrb.mxu3 %v154_v9  ;;  %v297_v49 = vld.sshfl [vmem:[#allocation1 + $0x10] sm:$0xff pattern:$0x73625140]  ;;  %v1592_v50 = vld.sshfl [vmem:[#allocation1 + $0x8] sm:$0xff pattern:$0x73625140] }
  0x28   :  { %412 = vmatpush.msrb.mxu0 %v104_v10  ;;  %431 = vmatpush.msrb.mxu1 %v121_v11  ;;  %v1594_v51 = vld.sshfl [vmem:[#allocation1 + $0x18] sm:$0xff pattern:$0x73625140]  ;;  %v145_v52 = vld [vmem:[%s2314_s1 + $0x3a8] sm:$0xff]  ;;  %v112_v54 = vld [vmem:[%s2314_s1 + $0x2a0] sm:$0xff] }
  0x29   :  { %452 = vmatpush.msrb.mxu2 %v136_v12  ;;  %471 = vmatpush.msrb.mxu3 %v153_v13  ;;  %v95_v53 = vld [vmem:[%s2314_s1 + $0x218] sm:$0xff]  ;;  %303 = vst [vmem:[#allocation1] ss:$4 sm:$0xff] %v1586_v46  ;;  %v144_v56 = vld [vmem:[%s2314_s1 + $0x3a0] sm:$0xff]  ;;  %v94_v57 = vld [vmem:[%s2314_s1 + $0x210] sm:$0xff] }
  0x2a   :  { %413 = vmatpush.msrb.mxu0 %v103_v14  ;;  %432 = vmatpush.msrb.mxu1 %v120_v15  ;;  %v127_v55 = vld [vmem:[%s2314_s1 + $0x318] sm:$0xff]  ;;  %v126_v59 = vld [vmem:[%s2314_s1 + $0x310] sm:$0xff]  ;;  %v93_v61 = vld [vmem:[%s2314_s1 + $0x208] sm:$0xff] }
  0x2b   :  { %453 = vmatpush.msrb.mxu2 %v135_v16  ;;  %472 = vmatpush.msrb.mxu3 %v152_v17  ;;  %v111_v58 = vld [vmem:[%s2314_s1 + $0x298] sm:$0xff]  ;;  %v110_v62 = vld [vmem:[%s2314_s1 + $0x290] sm:$0xff]  ;;  %v125_v4 = vld [vmem:[%s2314_s1 + $0x308] sm:$0xff] }
  0x2c   :  { %414 = vmatpush.msrb.mxu0 %v102_v18  ;;  %433 = vmatpush.msrb.mxu1 %v119_v19  ;;  %v143_v60 = vld [vmem:[%s2314_s1 + $0x398] sm:$0xff]  ;;  %v142_v5 = vld [vmem:[%s2314_s1 + $0x390] sm:$0xff]  ;;  %v92_v6 = vld [vmem:[%s2314_s1 + $0x200] sm:$0xff] }
  0x2d   :  { %454 = vmatpush.msrb.mxu2 %v134_v20  ;;  %473 = vmatpush.msrb.mxu3 %v151_v21  ;;  %v1633_v63 = vld [vmem:[%s2313_s0 + $0x18] sm:$0xff]  ;;  %v1635_v0 = vld.sshfl [vmem:[#allocation1 + $0x30] sm:$0xff pattern:$0x73625140]  ;;  %v109_v7 = vld [vmem:[%s2314_s1 + $0x288] sm:$0xff] }
  0x2e   :  { %415 = vmatpush.msrb.mxu0 %v101_v22  ;;  %434 = vmatpush.msrb.mxu1 %v118_v23  ;;  %v1637_v1 = vld.sshfl [vmem:[#allocation1 + $0x20] sm:$0xff pattern:$0x73625140]  ;;  %v1639_v2 = vld.sshfl [vmem:[#allocation1 + $0x38] sm:$0xff pattern:$0x73625140] }
  0x2f   :  { %455 = vmatpush.msrb.mxu2 %v133_v24  ;;  %474 = vmatpush.msrb.mxu3 %v150_v25  ;;  %v1641_v3 = vld.sshfl [vmem:[#allocation1 + $0x28] sm:$0xff pattern:$0x73625140]  ;;  %v124_v8 = vld [vmem:[%s2314_s1 + $0x300] sm:$0xff]  ;;  %v171_v10 = vld [vmem:[%s2314_s1 + $0x478] sm:$0xff] }
  0x30   :  { %416 = vmatpush.msrb.mxu0 %v100_v27  ;;  %435 = vmatpush.msrb.mxu1 %v117_v28  ;;  %304 = vst [vmem:[#allocation1 + $0x20] ss:$4 sm:$0xff] %v1633_v63  ;;  %v141_v9 = vld [vmem:[%s2314_s1 + $0x388] sm:$0xff]  ;;  %v203_v11 = vld [vmem:[%s2314_s1 + $0x578] sm:$0xff]  ;;  %v108_v12 = vld [vmem:[%s2314_s1 + $0x280] sm:$0xff] }
  0x31   :  { %456 = vmatpush.msrb.mxu2 %v132_v29  ;;  %475 = vmatpush.msrb.mxu3 %v149_v30  ;;  %v140_v13 = vld [vmem:[%s2314_s1 + $0x380] sm:$0xff]  ;;  %v170_v14 = vld [vmem:[%s2314_s1 + $0x470] sm:$0xff]  ;;  %v187_v15 = vld [vmem:[%s2314_s1 + $0x4f8] sm:$0xff] }
  0x32   :  { %417 = vmatpush.msrb.mxu0 %v99_v31  ;;  %436 = vmatpush.msrb.mxu1 %v116_v32  ;;  %v202_v16 = vld [vmem:[%s2314_s1 + $0x570] sm:$0xff]  ;;  %v219_v17 = vld [vmem:[%s2314_s1 + $0x5f8] sm:$0xff]  ;;  %v169_v18 = vld [vmem:[%s2314_s1 + $0x468] sm:$0xff] }
  0x33   :  { %457 = vmatpush.msrb.mxu2 %v131_v33  ;;  %476 = vmatpush.msrb.mxu3 %v148_v34  ;;  %v186_v19 = vld [vmem:[%s2314_s1 + $0x4f0] sm:$0xff]  ;;  %v201_v20 = vld [vmem:[%s2314_s1 + $0x568] sm:$0xff]  ;;  %v168_v22 = vld [vmem:[%s2314_s1 + $0x460] sm:$0xff] }
  0x34   :  { %418 = vmatpush.msrb.mxu0 %v98_v35  ;;  %437 = vmatpush.msrb.mxu1 %v115_v36  ;;  %v218_v21 = vld [vmem:[%s2314_s1 + $0x5f0] sm:$0xff]  ;;  %v185_v23 = vld [vmem:[%s2314_s1 + $0x4e8] sm:$0xff]  ;;  %v200_v24 = vld [vmem:[%s2314_s1 + $0x560] sm:$0xff] }
  0x35   :  { %458 = vmatpush.msrb.mxu2 %v130_v37  ;;  %477 = vmatpush.msrb.mxu3 %v147_v38  ;;  %v217_v25 = vld [vmem:[%s2314_s1 + $0x5e8] sm:$0xff]  ;;  %v167_v27 = vld [vmem:[%s2314_s1 + $0x458] sm:$0xff]  ;;  %v184_v28 = vld [vmem:[%s2314_s1 + $0x4e0] sm:$0xff] }
  0x36   :  { %419 = vmatpush.msrb.mxu0 %v97_v39  ;;  %438 = vmatpush.msrb.mxu1 %v114_v40  ;;  %v199_v29 = vld [vmem:[%s2314_s1 + $0x558] sm:$0xff]  ;;  %v216_v30 = vld [vmem:[%s2314_s1 + $0x5e0] sm:$0xff] }
  0x37   :  { %459 = vmatpush.msrb.mxu2 %v129_v41  ;;  %478 = vmatpush.msrb.mxu3 %v146_v42 }
  0x38   :  { %420 = vmatpush.msrb.mxu0 %v96_v44  ;;  %439 = vmatpush.msrb.mxu1 %v113_v45 }
  0x39   :  { %460 = vmatpush.msrb.mxu2 %v128_v47  ;;  %479 = vmatpush.msrb.mxu3 %v145_v52 }
  0x3a   :  { %421 = vmatpush.msrb.mxu0 %v95_v53  ;;  %440 = vmatpush.msrb.mxu1 %v112_v54 }
  0x3b   :  { %461 = vmatpush.msrb.mxu2 %v127_v55  ;;  %480 = vmatpush.msrb.mxu3 %v144_v56 }
  0x3c   :  { %422 = vmatpush.msrb.mxu0 %v94_v57  ;;  %441 = vmatpush.msrb.mxu1 %v111_v58 }
  0x3d   :  { %462 = vmatpush.msrb.mxu2 %v126_v59  ;;  %481 = vmatpush.msrb.mxu3 %v143_v60 }
  0x3e   :  { %423 = vmatpush.msrb.mxu0 %v93_v61  ;;  %442 = vmatpush.msrb.mxu1 %v110_v62 }
  0x3f   :  { %463 = vmatpush.msrb.mxu2 %v125_v4  ;;  %482 = vmatpush.msrb.mxu3 %v142_v5 }
  0x40   :  { %424 = vmatpush.msrb.mxu0 %v92_v6  ;;  %443 = vmatpush.msrb.mxu1 %v109_v7 }
  0x41   :  { %464 = vmatpush.msrb.mxu2 %v124_v8  ;;  %483 = vmatpush.msrb.mxu3 %v141_v9 }
  0x42   :  { %345 = vmatmul.f32.vlgmr.msra.gmra.mxu0 %v295_v48  ;;  %385 = vmatmul.f32.vlgmr.msra.gmra.mxu2 %v297_v49 }
  0x43   :  { %489 = vmatpush.msra.mxu0 %v171_v10  ;;  %529 = vmatpush.msra.mxu2 %v203_v11 }
  0x44   :  { %444 = vmatpush.msrb.mxu1 %v108_v12  ;;  %484 = vmatpush.msrb.mxu3 %v140_v13 }
  0x45   :  { %365 = vmatmul.f32.vlgmr.msra.gmra.mxu1 %v1592_v50  ;;  %405 = vmatmul.f32.vlgmr.msra.gmra.mxu3 %v1594_v51 }
  0x46   :  { %490 = vmatpush.msra.mxu0 %v170_v14  ;;  %509 = vmatpush.msra.mxu1 %v187_v15 }
  0x47   :  { %530 = vmatpush.msra.mxu2 %v202_v16  ;;  %549 = vmatpush.msra.mxu3 %v219_v17 }
  0x48   :  { %491 = vmatpush.msra.mxu0 %v169_v18  ;;  %510 = vmatpush.msra.mxu1 %v186_v19 }
  0x49   :  { %531 = vmatpush.msra.mxu2 %v201_v20  ;;  %550 = vmatpush.msra.mxu3 %v218_v21 }
  0x4a   :  { %492 = vmatpush.msra.mxu0 %v168_v22  ;;  %511 = vmatpush.msra.mxu1 %v185_v23 }
  0x4b   :  { %532 = vmatpush.msra.mxu2 %v200_v24  ;;  %551 = vmatpush.msra.mxu3 %v217_v25 }
  0x4c   :  { %11 = vsyncpa [#allocation3], 0  ;;  %465 = vmatmul.f32.vlgmr.msrb.gmra.mxu2 %v1635_v0  ;;  %493 = vmatpush.msra.mxu0 %v167_v27  ;;  %v166_v31 = vld [vmem:[%s2314_s1 + $0x450] sm:$0xff]  ;;  %v183_v32 = vld [vmem:[%s2314_s1 + $0x4d8] sm:$0xff]  ;;  %vm659_vm0 = vcmask 1041408   ;;  %vm655_vm1 = vcmask 15360  }
  0x4d   :  { %512 = vmatpush.msra.mxu1 %v184_v28  ;;  %533 = vmatpush.msra.mxu2 %v199_v29  ;;  %v198_v33 = vld [vmem:[%s2314_s1 + $0x550] sm:$0xff]  ;;  %v215_v34 = vld [vmem:[%s2314_s1 + $0x5d8] sm:$0xff]  ;;  %v165_v35 = vld [vmem:[%s2314_s1 + $0x448] sm:$0xff]  ;;  %vm766_vm5 = vcmask 261120   ;;  %vm1119_vm7 = vcmask 1045508   ;;  %vm1121_vm8 = vcmask 1043456  }
  0x4e   :  { %552 = vmatpush.msra.mxu3 %v216_v30  ;;  %425 = vmatmul.f32.vlgmr.msrb.gmra.mxu0 %v1637_v1  ;;  %v182_v36 = vld [vmem:[%s2314_s1 + $0x4d0] sm:$0xff]  ;;  %v197_v37 = vld [vmem:[%s2314_s1 + $0x548] sm:$0xff]  ;;  %v164_v39 = vld [vmem:[%s2314_s1 + $0x440] sm:$0xff]  ;;  %s1151_s19 = sshll.u32 %s2319_s6, 4  ;;  %s1152_s19 = int_to_ptr.hbm [resolvable:$true] %s1151_s19 }
  0x4f   :  { %485 = vmatmul.f32.vlgmr.msrb.gmra.mxu3 %v1639_v2  ;;  %494 = vmatpush.msra.mxu0 %v166_v31  ;;  %v214_v38 = vld [vmem:[%s2314_s1 + $0x5d0] sm:$0xff]  ;;  %v181_v40 = vld [vmem:[%s2314_s1 + $0x4c8] sm:$0xff]  ;;  %v196_v41 = vld [vmem:[%s2314_s1 + $0x540] sm:$0xff] }
  0x50   :  { %513 = vmatpush.msra.mxu1 %v183_v32  ;;  %534 = vmatpush.msra.mxu2 %v198_v33  ;;  %v213_v42 = vld [vmem:[%s2314_s1 + $0x5c8] sm:$0xff]  ;;  %v163_v44 = vld [vmem:[%s2314_s1 + $0x438] sm:$0xff]  ;;  %v180_v45 = vld [vmem:[%s2314_s1 + $0x4c0] sm:$0xff] }
  0x51   :  { %553 = vmatpush.msra.mxu3 %v215_v34  ;;  %445 = vmatmul.f32.vlgmr.msrb.gmra.mxu1 %v1641_v3  ;;  %v195_v47 = vld [vmem:[%s2314_s1 + $0x538] sm:$0xff]  ;;  %v212_v48 = vld [vmem:[%s2314_s1 + $0x5c0] sm:$0xff]  ;;  %v162_v49 = vld [vmem:[%s2314_s1 + $0x430] sm:$0xff] }
  0x52   :  { %495 = vmatpush.msra.mxu0 %v165_v35  ;;  %514 = vmatpush.msra.mxu1 %v182_v36  ;;  %v179_v50 = vld [vmem:[%s2314_s1 + $0x4b8] sm:$0xff]  ;;  %v194_v51 = vld [vmem:[%s2314_s1 + $0x530] sm:$0xff]  ;;  %v161_v53 = vld [vmem:[%s2314_s1 + $0x428] sm:$0xff] }
  0x53   :  { %535 = vmatpush.msra.mxu2 %v197_v37  ;;  %554 = vmatpush.msra.mxu3 %v214_v38  ;;  %v211_v52 = vld [vmem:[%s2314_s1 + $0x5b8] sm:$0xff]  ;;  %v178_v54 = vld [vmem:[%s2314_s1 + $0x4b0] sm:$0xff]  ;;  %v193_v55 = vld [vmem:[%s2314_s1 + $0x528] sm:$0xff] }
  0x54   :  { %496 = vmatpush.msra.mxu0 %v164_v39  ;;  %515 = vmatpush.msra.mxu1 %v181_v40  ;;  %v210_v56 = vld [vmem:[%s2314_s1 + $0x5b0] sm:$0xff]  ;;  %v160_v57 = vld [vmem:[%s2314_s1 + $0x420] sm:$0xff]  ;;  %v177_v58 = vld [vmem:[%s2314_s1 + $0x4a8] sm:$0xff] }
  0x55   :  { %536 = vmatpush.msra.mxu2 %v196_v41  ;;  %555 = vmatpush.msra.mxu3 %v213_v42  ;;  %v192_v59 = vld [vmem:[%s2314_s1 + $0x520] sm:$0xff]  ;;  %v209_v60 = vld [vmem:[%s2314_s1 + $0x5a8] sm:$0xff]  ;;  %v159_v61 = vld [vmem:[%s2314_s1 + $0x418] sm:$0xff] }
  0x56   :  { %497 = vmatpush.msra.mxu0 %v163_v44  ;;  %516 = vmatpush.msra.mxu1 %v180_v45  ;;  %v176_v62 = vld [vmem:[%s2314_s1 + $0x4a0] sm:$0xff]  ;;  %v191_v0 = vld [vmem:[%s2314_s1 + $0x518] sm:$0xff]  ;;  %v158_v2 = vld [vmem:[%s2314_s1 + $0x410] sm:$0xff] }
  0x57   :  { %537 = vmatpush.msra.mxu2 %v195_v47  ;;  %556 = vmatpush.msra.mxu3 %v212_v48  ;;  %v208_v1 = vld [vmem:[%s2314_s1 + $0x5a0] sm:$0xff]  ;;  %v175_v3 = vld [vmem:[%s2314_s1 + $0x498] sm:$0xff]  ;;  %v190_v4 = vld [vmem:[%s2314_s1 + $0x510] sm:$0xff] }
  0x58   :  { %498 = vmatpush.msra.mxu0 %v162_v49  ;;  %517 = vmatpush.msra.mxu1 %v179_v50  ;;  %v207_v5 = vld [vmem:[%s2314_s1 + $0x598] sm:$0xff]  ;;  %v157_v6 = vld [vmem:[%s2314_s1 + $0x408] sm:$0xff]  ;;  %v174_v7 = vld [vmem:[%s2314_s1 + $0x490] sm:$0xff] }
  0x59   :  { %538 = vmatpush.msra.mxu2 %v194_v51  ;;  %557 = vmatpush.msra.mxu3 %v211_v52  ;;  %v189_v8 = vld [vmem:[%s2314_s1 + $0x508] sm:$0xff]  ;;  %v206_v9 = vld [vmem:[%s2314_s1 + $0x590] sm:$0xff]  ;;  %v156_v10 = vld [vmem:[%s2314_s1 + $0x400] sm:$0xff] }
  0x5a   :  { %499 = vmatpush.msra.mxu0 %v161_v53  ;;  %518 = vmatpush.msra.mxu1 %v178_v54  ;;  %v173_v11 = vld [vmem:[%s2314_s1 + $0x488] sm:$0xff]  ;;  %v188_v12 = vld [vmem:[%s2314_s1 + $0x500] sm:$0xff]  ;;  %v307_v15 = vld.sshfl [vmem:[#allocation1 + $0x10] sm:$0xff pattern:$0x73625140] }
  0x5b   :  { %539 = vmatpush.msra.mxu2 %v193_v55  ;;  %558 = vmatpush.msra.mxu3 %v210_v56  ;;  %v205_v13 = vld [vmem:[%s2314_s1 + $0x588] sm:$0xff]  ;;  %v305_v14 = vld.sshfl [vmem:[#allocation1] sm:$0xff pattern:$0x73625140]  ;;  %v235_v16 = vld [vmem:[%s2314_s1 + $0x678] sm:$0xff] }
  0x5c   :  { %500 = vmatpush.msra.mxu0 %v160_v57  ;;  %519 = vmatpush.msra.mxu1 %v177_v58  ;;  %v267_v17 = vld [vmem:[%s2314_s1 + $0x778] sm:$0xff]  ;;  %v172_v18 = vld [vmem:[%s2314_s1 + $0x480] sm:$0xff]  ;;  %v306_v20 = vld.sshfl [vmem:[#allocation1 + $0x8] sm:$0xff pattern:$0x73625140] }
  0x5d   :  { %540 = vmatpush.msra.mxu2 %v192_v59  ;;  %559 = vmatpush.msra.mxu3 %v209_v60  ;;  %v204_v19 = vld [vmem:[%s2314_s1 + $0x580] sm:$0xff]  ;;  %v308_v21 = vld.sshfl [vmem:[#allocation1 + $0x18] sm:$0xff pattern:$0x73625140]  ;;  %v234_v22 = vld [vmem:[%s2314_s1 + $0x670] sm:$0xff] }
  0x5e   :  { %501 = vmatpush.msra.mxu0 %v159_v61  ;;  %520 = vmatpush.msra.mxu1 %v176_v62  ;;  %v251_v23 = vld [vmem:[%s2314_s1 + $0x6f8] sm:$0xff]  ;;  %v266_v24 = vld [vmem:[%s2314_s1 + $0x770] sm:$0xff]  ;;  %v233_v27 = vld [vmem:[%s2314_s1 + $0x668] sm:$0xff] }
  0x5f   :  { %541 = vmatpush.msra.mxu2 %v191_v0  ;;  %560 = vmatpush.msra.mxu3 %v208_v1  ;;  %v283_v25 = vld [vmem:[%s2314_s1 + $0x7f8] sm:$0xff]  ;;  %v250_v28 = vld [vmem:[%s2314_s1 + $0x6f0] sm:$0xff]  ;;  %v265_v29 = vld [vmem:[%s2314_s1 + $0x768] sm:$0xff] }
  0x60   :  { %502 = vmatpush.msra.mxu0 %v158_v2  ;;  %521 = vmatpush.msra.mxu1 %v175_v3  ;;  %v282_v30 = vld [vmem:[%s2314_s1 + $0x7f0] sm:$0xff]  ;;  %v232_v31 = vld [vmem:[%s2314_s1 + $0x660] sm:$0xff]  ;;  %v249_v32 = vld [vmem:[%s2314_s1 + $0x6e8] sm:$0xff] }
  0x61   :  { %542 = vmatpush.msra.mxu2 %v190_v4  ;;  %561 = vmatpush.msra.mxu3 %v207_v5  ;;  %v264_v33 = vld [vmem:[%s2314_s1 + $0x760] sm:$0xff]  ;;  %v281_v34 = vld [vmem:[%s2314_s1 + $0x7e8] sm:$0xff]  ;;  %v231_v35 = vld [vmem:[%s2314_s1 + $0x658] sm:$0xff] }
  0x62   :  { %503 = vmatpush.msra.mxu0 %v157_v6  ;;  %522 = vmatpush.msra.mxu1 %v174_v7  ;;  %v248_v36 = vld [vmem:[%s2314_s1 + $0x6e0] sm:$0xff]  ;;  %v263_v37 = vld [vmem:[%s2314_s1 + $0x758] sm:$0xff]  ;;  %v230_v39 = vld [vmem:[%s2314_s1 + $0x650] sm:$0xff] }
  0x63   :  { %543 = vmatpush.msra.mxu2 %v189_v8  ;;  %562 = vmatpush.msra.mxu3 %v206_v9  ;;  %v280_v38 = vld [vmem:[%s2314_s1 + $0x7e0] sm:$0xff]  ;;  %v247_v40 = vld [vmem:[%s2314_s1 + $0x6d8] sm:$0xff]  ;;  %v262_v41 = vld [vmem:[%s2314_s1 + $0x750] sm:$0xff] }
  0x64   :  { %504 = vmatpush.msra.mxu0 %v156_v10  ;;  %523 = vmatpush.msra.mxu1 %v173_v11  ;;  %v279_v42 = vld [vmem:[%s2314_s1 + $0x7d8] sm:$0xff]  ;;  %v229_v44 = vld [vmem:[%s2314_s1 + $0x648] sm:$0xff]  ;;  %v246_v45 = vld [vmem:[%s2314_s1 + $0x6d0] sm:$0xff] }
  0x65   :  { %544 = vmatpush.msra.mxu2 %v188_v12  ;;  %563 = vmatpush.msra.mxu3 %v205_v13  ;;  %v261_v47 = vld [vmem:[%s2314_s1 + $0x748] sm:$0xff]  ;;  %v278_v48 = vld [vmem:[%s2314_s1 + $0x7d0] sm:$0xff]  ;;  %v228_v49 = vld [vmem:[%s2314_s1 + $0x640] sm:$0xff] }
  0x66   :  { %505 = vmatmul.f32.vlgmr.msra.gmra.mxu0 %v305_v14  ;;  %545 = vmatmul.f32.vlgmr.msra.gmra.mxu2 %v307_v15  ;;  %v245_v50 = vld [vmem:[%s2314_s1 + $0x6c8] sm:$0xff]  ;;  %v260_v51 = vld [vmem:[%s2314_s1 + $0x740] sm:$0xff]  ;;  %v227_v53 = vld [vmem:[%s2314_s1 + $0x638] sm:$0xff] }
  0x67   :  { %569 = vmatpush.msrb.mxu0 %v235_v16  ;;  %609 = vmatpush.msrb.mxu2 %v267_v17  ;;  %v277_v52 = vld [vmem:[%s2314_s1 + $0x7c8] sm:$0xff]  ;;  %v244_v54 = vld [vmem:[%s2314_s1 + $0x6c0] sm:$0xff]  ;;  %v259_v55 = vld [vmem:[%s2314_s1 + $0x738] sm:$0xff] }
  0x68   :  { %524 = vmatpush.msra.mxu1 %v172_v18  ;;  %564 = vmatpush.msra.mxu3 %v204_v19  ;;  %v276_v56 = vld [vmem:[%s2314_s1 + $0x7c0] sm:$0xff]  ;;  %v226_v57 = vld [vmem:[%s2314_s1 + $0x630] sm:$0xff]  ;;  %v243_v58 = vld [vmem:[%s2314_s1 + $0x6b8] sm:$0xff] }
  0x69   :  { %525 = vmatmul.f32.vlgmr.msra.gmra.mxu1 %v306_v20  ;;  %565 = vmatmul.f32.vlgmr.msra.gmra.mxu3 %v308_v21  ;;  %v258_v59 = vld [vmem:[%s2314_s1 + $0x730] sm:$0xff]  ;;  %v275_v60 = vld [vmem:[%s2314_s1 + $0x7b8] sm:$0xff]  ;;  %v225_v61 = vld [vmem:[%s2314_s1 + $0x628] sm:$0xff] }
  0x6a   :  { %570 = vmatpush.msrb.mxu0 %v234_v22  ;;  %589 = vmatpush.msrb.mxu1 %v251_v23  ;;  %v242_v62 = vld [vmem:[%s2314_s1 + $0x6b0] sm:$0xff]  ;;  %v257_v0 = vld [vmem:[%s2314_s1 + $0x728] sm:$0xff]  ;;  %v224_v2 = vld [vmem:[%s2314_s1 + $0x620] sm:$0xff] }
  0x6b   :  { %610 = vmatpush.msrb.mxu2 %v266_v24  ;;  %629 = vmatpush.msrb.mxu3 %v283_v25  ;;  %v274_v1 = vld [vmem:[%s2314_s1 + $0x7b0] sm:$0xff]  ;;  %v241_v3 = vld [vmem:[%s2314_s1 + $0x6a8] sm:$0xff]  ;;  %v256_v4 = vld [vmem:[%s2314_s1 + $0x720] sm:$0xff] }
  0x6c   :  { %571 = vmatpush.msrb.mxu0 %v233_v27  ;;  %590 = vmatpush.msrb.mxu1 %v250_v28  ;;  %v273_v5 = vld [vmem:[%s2314_s1 + $0x7a8] sm:$0xff]  ;;  %v223_v6 = vld [vmem:[%s2314_s1 + $0x618] sm:$0xff]  ;;  %v240_v7 = vld [vmem:[%s2314_s1 + $0x6a0] sm:$0xff] }
  0x6d   :  { %611 = vmatpush.msrb.mxu2 %v265_v29  ;;  %630 = vmatpush.msrb.mxu3 %v282_v30  ;;  %v255_v8 = vld [vmem:[%s2314_s1 + $0x718] sm:$0xff]  ;;  %v272_v9 = vld [vmem:[%s2314_s1 + $0x7a0] sm:$0xff]  ;;  %v222_v10 = vld [vmem:[%s2314_s1 + $0x610] sm:$0xff] }
  0x6e   :  { %572 = vmatpush.msrb.mxu0 %v232_v31  ;;  %591 = vmatpush.msrb.mxu1 %v249_v32  ;;  %v239_v11 = vld [vmem:[%s2314_s1 + $0x698] sm:$0xff]  ;;  %v254_v12 = vld [vmem:[%s2314_s1 + $0x710] sm:$0xff]  ;;  %v221_v14 = vld [vmem:[%s2314_s1 + $0x608] sm:$0xff] }
  0x6f   :  { %612 = vmatpush.msrb.mxu2 %v264_v33  ;;  %631 = vmatpush.msrb.mxu3 %v281_v34  ;;  %v271_v13 = vld [vmem:[%s2314_s1 + $0x798] sm:$0xff]  ;;  %v238_v15 = vld [vmem:[%s2314_s1 + $0x690] sm:$0xff]  ;;  %v253_v16 = vld [vmem:[%s2314_s1 + $0x708] sm:$0xff] }
  0x70   :  { %573 = vmatpush.msrb.mxu0 %v231_v35  ;;  %592 = vmatpush.msrb.mxu1 %v248_v36  ;;  %v270_v17 = vld [vmem:[%s2314_s1 + $0x790] sm:$0xff]  ;;  %v220_v18 = vld [vmem:[%s2314_s1 + $0x600] sm:$0xff]  ;;  %v237_v19 = vld [vmem:[%s2314_s1 + $0x688] sm:$0xff] }
  0x71   :  { %613 = vmatpush.msrb.mxu2 %v263_v37  ;;  %632 = vmatpush.msrb.mxu3 %v280_v38  ;;  %v252_v20 = vld [vmem:[%s2314_s1 + $0x700] sm:$0xff]  ;;  %v269_v21 = vld [vmem:[%s2314_s1 + $0x788] sm:$0xff]  ;;  %v311_v23 = vld.sshfl [vmem:[#allocation1 + $0x30] sm:$0xff pattern:$0x73625140] }
  0x72   :  { %574 = vmatpush.msrb.mxu0 %v230_v39  ;;  %593 = vmatpush.msrb.mxu1 %v247_v40  ;;  %v309_v22 = vld.sshfl [vmem:[#allocation1 + $0x20] sm:$0xff pattern:$0x73625140]  ;;  %v310_v27 = vld.sshfl [vmem:[#allocation1 + $0x28] sm:$0xff pattern:$0x73625140] }
  0x73   :  { %614 = vmatpush.msrb.mxu2 %v262_v41  ;;  %633 = vmatpush.msrb.mxu3 %v279_v42  ;;  %v236_v24 = vld [vmem:[%s2314_s1 + $0x680] sm:$0xff]  ;;  %v312_v28 = vld.sshfl [vmem:[#allocation1 + $0x38] sm:$0xff pattern:$0x73625140] }
  0x74   :  { %575 = vmatpush.msrb.mxu0 %v229_v44  ;;  %594 = vmatpush.msrb.mxu1 %v246_v45  ;;  %v268_v25 = vld [vmem:[%s2314_s1 + $0x780] sm:$0xff] }
  0x75   :  { %615 = vmatpush.msrb.mxu2 %v261_v47  ;;  %634 = vmatpush.msrb.mxu3 %v278_v48  ;;  %v1180_v29 = vld [vmem:[%s2315_s2] ss:$0 sm:$0xff] }
  0x76   :  { %576 = vmatpush.msrb.mxu0 %v228_v49  ;;  %595 = vmatpush.msrb.mxu1 %v245_v50  ;;  %v650_v38 = vld [vmem:[%s2316_s3] sm:$0x3] }
  0x77   :  { %616 = vmatpush.msrb.mxu2 %v260_v51  ;;  %635 = vmatpush.msrb.mxu3 %v277_v52 }
  0x78   :  { %577 = vmatpush.msrb.mxu0 %v227_v53  ;;  %596 = vmatpush.msrb.mxu1 %v244_v54 }
  0x79   :  { %617 = vmatpush.msrb.mxu2 %v259_v55  ;;  %636 = vmatpush.msrb.mxu3 %v276_v56 }
  0x7a   :  { %578 = vmatpush.msrb.mxu0 %v226_v57  ;;  %597 = vmatpush.msrb.mxu1 %v243_v58 }
  0x7b   :  { %618 = vmatpush.msrb.mxu2 %v258_v59  ;;  %637 = vmatpush.msrb.mxu3 %v275_v60 }
  0x7c   :  { %579 = vmatpush.msrb.mxu0 %v225_v61  ;;  %598 = vmatpush.msrb.mxu1 %v242_v62 }
  0x7d   :  { %619 = vmatpush.msrb.mxu2 %v257_v0  ;;  %638 = vmatpush.msrb.mxu3 %v274_v1 }
  0x7e   :  { %580 = vmatpush.msrb.mxu0 %v224_v2  ;;  %599 = vmatpush.msrb.mxu1 %v241_v3  ;;  %v751_v3 = vld [vmem:[%s2318_s5 + $0x188] sm:$0xff] }
  0x7f   :  { %620 = vmatpush.msrb.mxu2 %v256_v4  ;;  %639 = vmatpush.msrb.mxu3 %v273_v5  ;;  %v752_v4 = vld [vmem:[%s2318_s5 + $0x190] sm:$0xff]  ;;  %v750_v5 = vld [vmem:[%s2318_s5 + $0x180] sm:$0xff] }
  0x80   :  { %581 = vmatpush.msrb.mxu0 %v223_v6  ;;  %600 = vmatpush.msrb.mxu1 %v240_v7  ;;  %v753_v6 = vld [vmem:[%s2318_s5 + $0x198] sm:$0xff]  ;;  %v735_v7 = vld [vmem:[%s2318_s5 + $0x108] sm:$0xff] }
  0x81   :  { %621 = vmatpush.msrb.mxu2 %v255_v8  ;;  %640 = vmatpush.msrb.mxu3 %v272_v9  ;;  %v736_v8 = vld [vmem:[%s2318_s5 + $0x110] sm:$0xff]  ;;  %v734_v9 = vld [vmem:[%s2318_s5 + $0x100] sm:$0xff] }
  0x82   :  { %582 = vmatpush.msrb.mxu0 %v222_v10  ;;  %601 = vmatpush.msrb.mxu1 %v239_v11  ;;  %v737_v10 = vld [vmem:[%s2318_s5 + $0x118] sm:$0xff]  ;;  %v719_v11 = vld [vmem:[%s2318_s5 + $0x88] sm:$0xff] }
  0x83   :  { %622 = vmatpush.msrb.mxu2 %v254_v12  ;;  %641 = vmatpush.msrb.mxu3 %v271_v13  ;;  %v720_v12 = vld [vmem:[%s2318_s5 + $0x90] sm:$0xff]  ;;  %v718_v13 = vld [vmem:[%s2318_s5 + $0x80] sm:$0xff] }
  0x84   :  { %583 = vmatpush.msrb.mxu0 %v221_v14  ;;  %602 = vmatpush.msrb.mxu1 %v238_v15  ;;  %v1181_v14 = vld [vmem:[%s2317_s4] ss:$0 sm:$0xff]  ;;  %v721_v15 = vld [vmem:[%s2318_s5 + $0x98] sm:$0xff] }
  0x85   :  { %623 = vmatpush.msrb.mxu2 %v253_v16  ;;  %642 = vmatpush.msrb.mxu3 %v270_v17  ;;  %v703_v16 = vld [vmem:[%s2318_s5 + $0x8] sm:$0xff]  ;;  %v704_v17 = vld [vmem:[%s2318_s5 + $0x10] sm:$0xff] }
  0x86   :  { %584 = vmatpush.msrb.mxu0 %v220_v18  ;;  %603 = vmatpush.msrb.mxu1 %v237_v19  ;;  %v702_v18 = vld [vmem:[%s2318_s5] sm:$0xff]  ;;  %v705_v19 = vld [vmem:[%s2318_s5 + $0x18] sm:$0xff] }
  0x87   :  { %624 = vmatpush.msrb.mxu2 %v252_v20  ;;  %643 = vmatpush.msrb.mxu3 %v269_v21  ;;  %v755_v21 = vld [vmem:[%s2318_s5 + $0x1a8] sm:$0xff] }
  0x88   :  { %585 = vmatmul.f32.vlgmr.msrb.gmra.mxu0 %v309_v22  ;;  %625 = vmatmul.f32.vlgmr.msrb.gmra.mxu2 %v311_v23  ;;  %v756_v22 = vld [vmem:[%s2318_s5 + $0x1b0] sm:$0xff]  ;;  %v754_v23 = vld [vmem:[%s2318_s5 + $0x1a0] sm:$0xff] }
  0x89   :  { %604 = vmatpush.msrb.mxu1 %v236_v24  ;;  %644 = vmatpush.msrb.mxu3 %v268_v25  ;;  %v757_v25 = vld [vmem:[%s2318_s5 + $0x1b8] sm:$0xff] }
  0x8a   :  { %605 = vmatmul.f32.vlgmr.msrb.gmra.mxu1 %v310_v27  ;;  %645 = vmatmul.f32.vlgmr.msrb.gmra.mxu3 %v312_v28  ;;  %v739_v27 = vld [vmem:[%s2318_s5 + $0x128] sm:$0xff]  ;;  %v740_v28 = vld [vmem:[%s2318_s5 + $0x130] sm:$0xff] }
  0x8b   :  { %1160 = vmatpush.msk.msra.mxu0 %vm659_vm0, %v650_v38  ;;  %802 = vmatpush.msra.mxu2 %v751_v3  ;;  %v706_v38 = vld [vmem:[%s2318_s5 + $0x20] sm:$0xff]  ;;  %v711_v3 = vld [vmem:[%s2318_s5 + $0x48] sm:$0xff] }
  0x8c   :  { %822 = vmatpush.msra.mxu3 %v752_v4  ;;  %782 = vmatpush.msra.mxu1 %v750_v5  ;;  %v712_v4 = vld [vmem:[%s2318_s5 + $0x50] sm:$0xff]  ;;  %v710_v5 = vld [vmem:[%s2318_s5 + $0x40] sm:$0xff] }
  0x8d   :  { %842 = vmatpush.msrb.mxu0 %v753_v6  ;;  %803 = vmatpush.msra.mxu2 %v735_v7  ;;  %v713_v6 = vld [vmem:[%s2318_s5 + $0x58] sm:$0xff]  ;;  %v763_v7 = vld [vmem:[%s2318_s5 + $0x1e8] sm:$0xff] }
  0x8e   :  { %823 = vmatpush.msra.mxu3 %v736_v8  ;;  %783 = vmatpush.msra.mxu1 %v734_v9  ;;  %v764_v8 = vld [vmem:[%s2318_s5 + $0x1f0] sm:$0xff]  ;;  %v762_v9 = vld [vmem:[%s2318_s5 + $0x1e0] sm:$0xff] }
  0x8f   :  { %843 = vmatpush.msrb.mxu0 %v737_v10  ;;  %804 = vmatpush.msra.mxu2 %v719_v11  ;;  %v765_v10 = vld [vmem:[%s2318_s5 + $0x1f8] sm:$0xff]  ;;  %v747_v11 = vld [vmem:[%s2318_s5 + $0x168] sm:$0xff] }
  0x90   :  { %824 = vmatpush.msra.mxu3 %v720_v12  ;;  %784 = vmatpush.msra.mxu1 %v718_v13  ;;  %v748_v12 = vld [vmem:[%s2318_s5 + $0x170] sm:$0xff]  ;;  %v746_v13 = vld [vmem:[%s2318_s5 + $0x160] sm:$0xff] }
  0x91   :  { %844 = vmatpush.msrb.mxu0 %v721_v15  ;;  %805 = vmatpush.msra.mxu2 %v703_v16  ;;  %v731_v15 = vld [vmem:[%s2318_s5 + $0xe8] sm:$0xff]  ;;  %v732_v16 = vld [vmem:[%s2318_s5 + $0xf0] sm:$0xff] }
  0x92   :  { %825 = vmatpush.msra.mxu3 %v704_v17  ;;  %785 = vmatpush.msra.mxu1 %v702_v18  ;;  %v730_v17 = vld [vmem:[%s2318_s5 + $0xe0] sm:$0xff]  ;;  %v733_v18 = vld [vmem:[%s2318_s5 + $0xf8] sm:$0xff] }
  0x93   :  { %845 = vmatpush.msrb.mxu0 %v705_v19  ;;  %882 = vmatpush.msrb.mxu2 %v755_v21  ;;  %v715_v19 = vld [vmem:[%s2318_s5 + $0x68] sm:$0xff]  ;;  %v714_v21 = vld [vmem:[%s2318_s5 + $0x60] sm:$0xff] }
  0x94   :  { %902 = vmatpush.msrb.mxu3 %v756_v22  ;;  %862 = vmatpush.msrb.mxu1 %v754_v23  ;;  %v717_v22 = vld [vmem:[%s2318_s5 + $0x78] sm:$0xff] }
  0x95   :  { %883 = vmatpush.msrb.mxu2 %v739_v27 }
  0x96   :  { %903 = vmatpush.msrb.mxu3 %v740_v28 }
  0xbf   :  { %v346_v30 = vpop.f32.mrf.mxu0 }
  0xc0   :  { %v347_v31 = vadd.f32 %v1180_v29, %v346_v30  ;;  %v738_v29 = vld [vmem:[%s2318_s5 + $0x120] sm:$0xff]  ;;  %v741_v30 = vld [vmem:[%s2318_s5 + $0x138] sm:$0xff] }
  0xc1   :  { %863 = vmatpush.msrb.mxu1 %v738_v29 }
  0xc2   :  { %v366_v32 = vpop.f32.mrf.mxu1 }
  0xc3   :  { %v367_v33 = vadd.f32 %v366_v32, %v347_v31  ;;  %v723_v31 = vld [vmem:[%s2318_s5 + $0xa8] sm:$0xff] }
  0xc4   :  { %884 = vmatpush.msrb.mxu2 %v723_v31 }
  0xc5   :  { %v386_v34 = vpop.f32.mrf.mxu2 }
  0xc6   :  { %v387_v35 = vadd.f32 %v386_v34, %v367_v33  ;;  %v724_v33 = vld [vmem:[%s2318_s5 + $0xb0] sm:$0xff]  ;;  %v722_v34 = vld [vmem:[%s2318_s5 + $0xa0] sm:$0xff] }
  0xc7   :  { %904 = vmatpush.msrb.mxu3 %v724_v33  ;;  %864 = vmatpush.msrb.mxu1 %v722_v34 }
  0xc8   :  { %v406_v36 = vpop.f32.mrf.mxu3 }
  0xc9   :  { %v407_v37 = vadd.f32 %v406_v36, %v387_v35  ;;  %v725_v35 = vld [vmem:[%s2318_s5 + $0xb8] sm:$0xff]  ;;  %v707_v36 = vld [vmem:[%s2318_s5 + $0x28] sm:$0xff]  ;;  %865 = vmatpush.msrb.mxu1 %v706_v38 }
  0xca   :  { %885 = vmatpush.msrb.mxu2 %v707_v36 }
  0xcb   :  { %v426_v39 = vpop.f32.mrf.mxu0 }
  0xcc   :  { %v427_v40 = vadd.f32 %v426_v39, %v407_v37  ;;  %v708_v37 = vld [vmem:[%s2318_s5 + $0x30] sm:$0xff]  ;;  %v709_v39 = vld [vmem:[%s2318_s5 + $0x38] sm:$0xff] }
  0xcd   :  { %905 = vmatpush.msrb.mxu3 %v708_v37 }
  0xce   :  { %v446_v41 = vpop.f32.mrf.mxu1 }
  0xcf   :  { %v447_v42 = vadd.f32 %v446_v41, %v427_v40  ;;  %v466_v44 = vpop.f32.mrf.mxu2 }
  0xd1   :  { %v467_v45 = vadd.f32 %v466_v44, %v447_v42 }
  0xd2   :  { %v486_v47 = vpop.f32.mrf.mxu3 }
  0xd3   :  { %v487_v49 = vadd.f32 %v486_v47, %v467_v45 }
  0xe3   :  { %v506_v48 = vpop.f32.mrf.mxu0 }
  0xe4   :  { %v507_v50 = vadd.f32 %v506_v48, %v487_v49 }
  0xe6   :  { %v526_v51 = vpop.f32.mrf.mxu1 }
  0xe7   :  { %v527_v53 = vadd.f32 %v526_v51, %v507_v50 }
  0xe9   :  { %v546_v52 = vpop.f32.mrf.mxu2 }
  0xea   :  { %v547_v54 = vadd.f32 %v546_v52, %v527_v53 }
  0xec   :  { %v566_v55 = vpop.f32.mrf.mxu3 }
  0xed   :  { %v567_v56 = vadd.f32 %v566_v55, %v547_v54  ;;  %v759_v54 = vld [vmem:[%s2318_s5 + $0x1c8] sm:$0xff]  ;;  %v760_v55 = vld [vmem:[%s2318_s5 + $0x1d0] sm:$0xff] }
 0x105   :  { %v586_v57 = vpop.f32.mrf.mxu0 }
 0x106   :  { %v587_v58 = vadd.f32 %v586_v57, %v567_v56  ;;  %v758_v56 = vld [vmem:[%s2318_s5 + $0x1c0] sm:$0xff]  ;;  %v761_v57 = vld [vmem:[%s2318_s5 + $0x1d8] sm:$0xff] }
 0x107   :  { %v606_v59 = vpop.f32.mrf.mxu1 }
 0x108   :  { %v607_v60 = vadd.f32 %v606_v59, %v587_v58  ;;  %v743_v58 = vld [vmem:[%s2318_s5 + $0x148] sm:$0xff]  ;;  %v744_v59 = vld [vmem:[%s2318_s5 + $0x150] sm:$0xff] }
 0x10b   :  { %v626_v61 = vpop.f32.mrf.mxu2 }
 0x10c   :  { %v627_v62 = vadd.f32 %v626_v61, %v607_v60  ;;  %v742_v60 = vld [vmem:[%s2318_s5 + $0x140] sm:$0xff]  ;;  %v745_v61 = vld [vmem:[%s2318_s5 + $0x158] sm:$0xff] }
 0x10d   :  { %v646_v0 = vpop.f32.mrf.mxu3 }
 0x10e   :  { %v647_v1 = vadd.f32 %v646_v0, %v627_v62  ;;  %v727_v62 = vld [vmem:[%s2318_s5 + $0xc8] sm:$0xff]  ;;  %v728_v0 = vld [vmem:[%s2318_s5 + $0xd0] sm:$0xff] }
 0x110   :  { %v649_v2 = vmax.f32 %v647_v1, 0.0  ;;  %v726_v1 = vld [vmem:[%s2318_s5 + $0xc0] sm:$0xff] }
 0x112   :  { %1161 = vmatmul.msk.f32.vlgmr.msra.gmra.mxu0 %vm655_vm1, %v649_v2  ;;  %v729_v2 = vld [vmem:[%s2318_s5 + $0xd8] sm:$0xff] }
 0x113   :  { %922 = vmatpush.msra.mxu0 %v757_v25 }
 0x115   :  { %923 = vmatpush.msra.mxu0 %v741_v30 }
 0x117   :  { %924 = vmatpush.msra.mxu0 %v725_v35 }
 0x119   :  { %925 = vmatpush.msra.mxu0 %v709_v39 }
 0x18f   :  { %v680_v20 = vpop.f32.mrf.mxu0 }
 0x190   :  { %v681_v24 = vadd.f32 %v1181_v14, %v680_v20  ;;  %v749_v14 = vld [vmem:[%s2318_s5 + $0x178] sm:$0xff]  ;;  %v716_v20 = vld [vmem:[%s2318_s5 + $0x70] sm:$0xff]  ;;  %s1212_s5 = smov [#allocation2]  }
 0x191   :  { %s1149_s16 = sshll.u32 %s1212_s5, 4  ;;  %s1150_s16 = int_to_ptr.vmem [resolvable:$true] %s1149_s16 }
 0x192   :  { %v1162_v32 = vmul.f32 -1.442695, %v681_v24 }
 0x194   :  { %1182 = vpow2.f32 %v1162_v32 }
 0x19a   :  { %v1183_v40 = vpop.eup %1182 }
 0x19b   :  { %v686_v41 = vadd.f32 1.0, %v1183_v40 }
 0x19d   :  { %1184 = vrcp.f32 %v686_v41  ;;  %v698_v47 = vand.u32 2147483648, %v686_v41  ;;  %v696_v49 = vand.u32 2147483647, %v686_v41  ;;  %vm692_vm3 = vweird.f32 %v686_v41 }
 0x19f   :  { %v699_v51 = vor.u32 1.1754944e-38, %v698_v47  ;;  %vm697_vm6 = vcmp.eq.f32.partialorder %v696_v49, 8.507059e+37 }
 0x1a3   :  { %v1185_v42 = vpop.eup %1184 }
 0x1a4   :  { %v688_v44 = vmul.f32 %v1185_v42, %v686_v41  ;;  %vm693_vm2 = vweird.f32 %v1185_v42 }
 0x1a5   :  { %vm694_vm4 = vmor %vm692_vm3, %vm693_vm2 }
 0x1a6   :  { %v689_v45 = vsub.f32 1.0, %v688_v44 }
 0x1a8   :  { %v690_v48 = vmul.f32 %v1185_v42, %v689_v45 }
 0x1aa   :  { %v691_v50 = vadd.f32 %v1185_v42, %v690_v48 }
 0x1ac   :  { %v695_v52 = vsel %vm694_vm4, %v1185_v42, %v691_v50 }
 0x1ad   :  { %v2164_v53 = vsel %vm697_vm6, %v699_v51, %v695_v52 }
 0x1ae   :  { %1163 = vmatmul.msk.f32.vlgmr.msra.gmra.mxu1 %vm766_vm5, %v2164_v53  ;;  %1164 = vmatmul.msk.f32.vlgmr.msra.gmra.mxu2 %vm766_vm5, %v2164_v53 }
 0x1af   :  { %1165 = vmatmul.msk.f32.vlgmr.msra.gmra.mxu3 %vm766_vm5, %v2164_v53  ;;  %1166 = vmatmul.msk.f32.vlgmr.msrb.gmra.mxu0 %vm766_vm5, %v2164_v53 }
 0x1b0   :  { %962 = vmatpush.msra.mxu2 %v759_v54  ;;  %982 = vmatpush.msra.mxu3 %v760_v55 }
 0x1b1   :  { %942 = vmatpush.msra.mxu1 %v758_v56  ;;  %1002 = vmatpush.msrb.mxu0 %v761_v57 }
 0x1b2   :  { %963 = vmatpush.msra.mxu2 %v743_v58  ;;  %983 = vmatpush.msra.mxu3 %v744_v59 }
 0x1b3   :  { %943 = vmatpush.msra.mxu1 %v742_v60  ;;  %1003 = vmatpush.msrb.mxu0 %v745_v61 }
 0x1b4   :  { %964 = vmatpush.msra.mxu2 %v727_v62  ;;  %984 = vmatpush.msra.mxu3 %v728_v0 }
 0x1b5   :  { %944 = vmatpush.msra.mxu1 %v726_v1  ;;  %1004 = vmatpush.msrb.mxu0 %v729_v2 }
 0x1b6   :  { %1167 = vmatmul.msk.f32.vlgmr.msrb.gmra.mxu1 %vm766_vm5, %v2164_v53  ;;  %1168 = vmatmul.msk.f32.vlgmr.msrb.gmra.mxu2 %vm766_vm5, %v2164_v53 }
 0x1b7   :  { %1169 = vmatmul.msk.f32.vlgmr.msrb.gmra.mxu3 %vm766_vm5, %v2164_v53  ;;  %1170 = vmatmul.msk.f32.vlgmr.msra.gmra.mxu0 %vm766_vm5, %v2164_v53 }
 0x1b8   :  { %965 = vmatpush.msra.mxu2 %v711_v3  ;;  %985 = vmatpush.msra.mxu3 %v712_v4 }
 0x1b9   :  { %945 = vmatpush.msra.mxu1 %v710_v5  ;;  %1005 = vmatpush.msrb.mxu0 %v713_v6 }
 0x1ba   :  { %1042 = vmatpush.msrb.mxu2 %v763_v7  ;;  %1062 = vmatpush.msrb.mxu3 %v764_v8 }
 0x1bb   :  { %1022 = vmatpush.msrb.mxu1 %v762_v9  ;;  %1082 = vmatpush.msra.mxu0 %v765_v10 }
 0x1bc   :  { %1043 = vmatpush.msrb.mxu2 %v747_v11  ;;  %1063 = vmatpush.msrb.mxu3 %v748_v12 }
 0x1bd   :  { %1023 = vmatpush.msrb.mxu1 %v746_v13  ;;  %1083 = vmatpush.msra.mxu0 %v749_v14 }
 0x1be   :  { %1171 = vmatmul.msk.f32.vlgmr.msra.gmra.mxu1 %vm766_vm5, %v2164_v53  ;;  %1172 = vmatmul.msk.f32.vlgmr.msra.gmra.mxu2 %vm766_vm5, %v2164_v53 }
 0x1bf   :  { %1173 = vmatmul.msk.f32.vlgmr.msra.gmra.mxu3 %vm766_vm5, %v2164_v53  ;;  %1174 = vmatmul.msk.f32.vlgmr.msrb.gmra.mxu0 %vm766_vm5, %v2164_v53 }
 0x1c0   :  { %1044 = vmatpush.msrb.mxu2 %v731_v15  ;;  %1064 = vmatpush.msrb.mxu3 %v732_v16 }
 0x1c1   :  { %1024 = vmatpush.msrb.mxu1 %v730_v17  ;;  %1084 = vmatpush.msra.mxu0 %v733_v18 }
 0x1c2   :  { %1045 = vmatpush.msrb.mxu2 %v715_v19  ;;  %1065 = vmatpush.msrb.mxu3 %v716_v20 }
 0x1c3   :  { %1025 = vmatpush.msrb.mxu1 %v714_v21  ;;  %1085 = vmatpush.msra.mxu0 %v717_v22 }
 0x1c6   :  { %1175 = vmatmul.msk.f32.vlgmr.msrb.gmra.mxu1 %vm766_vm5, %v2164_v53  ;;  %1176 = vmatmul.msk.f32.vlgmr.msrb.gmra.mxu2 %vm766_vm5, %v2164_v53 }
 0x1c7   :  { %1177 = vmatmul.msk.f32.vlgmr.msrb.gmra.mxu3 %vm766_vm5, %v2164_v53  ;;  %1178 = vmatmul.msk.f32.vlgmr.msra.gmra.mxu0 %vm766_vm5, %v2164_v53 }
 0x22b   :  { %v787_v24 = vpop.f32.mrf.mxu1 }
 0x22c   :  { %v847_v23 = vpop.f32.mrf.mxu0 }
 0x22d   :  { %v1108_v29 = vrot.slane %v847_v23, 2 }
 0x231   :  { %v807_v25 = vpop.f32.mrf.mxu2 }
 0x232   :  { %v1106_v27 = vrot.slane %v807_v25, 6  ;;  %v827_v28 = vpop.f32.mrf.mxu3 }
 0x233   :  { %v1107_v30 = vrot.slane %v827_v28, 4  ;;  %v867_v36 = vpop.f32.mrf.mxu1 }
 0x234   :  { %v1118_v31 = vsel %vm659_vm0, %v787_v24, %v1106_v27  ;;  %v927_v32 = vpop.f32.mrf.mxu0 }
 0x235   :  { %v1120_v33 = vsel %vm1119_vm7, %v1107_v30, %v1108_v29  ;;  %v1111_v40 = vrot.slane %v927_v32, 2 }
 0x236   :  { %v1122_v34 = vsel %vm1121_vm8, %v1118_v31, %v1120_v33 }
 0x237   :  { %v1136_v35 = vmul.f32 %v1122_v34, %v1521_v26 }
 0x239   :  { %1140 = vst [vmem:[#allocation2] sm:$0xff] %v1136_v35  ;;  %v887_v37 = vpop.f32.mrf.mxu2 }
 0x23a   :  { %v1109_v38 = vrot.slane %v887_v37, 6  ;;  %v907_v39 = vpop.f32.mrf.mxu3 }
 0x23b   :  { %v1110_v41 = vrot.slane %v907_v39, 4  ;;  %v947_v49 = vpop.f32.mrf.mxu1 }
 0x23c   :  { %v1123_v42 = vsel %vm659_vm0, %v867_v36, %v1109_v38  ;;  %v1007_v47 = vpop.f32.mrf.mxu0 }
 0x23d   :  { %v1124_v44 = vsel %vm1119_vm7, %v1110_v41, %v1111_v40  ;;  %v1114_v52 = vrot.slane %v1007_v47, 2 }
 0x23e   :  { %v1125_v45 = vsel %vm1121_vm8, %v1123_v42, %v1124_v44 }
 0x23f   :  { %v1137_v48 = vmul.f32 %v1125_v45, %v1575_v43 }
 0x241   :  { %1141 = vst [vmem:[#allocation2 + $0x8] sm:$0xff] %v1137_v48  ;;  %v967_v50 = vpop.f32.mrf.mxu2 }
 0x242   :  { %v1112_v26 = vrot.slane %v967_v50, 6  ;;  %v987_v51 = vpop.f32.mrf.mxu3 }
 0x243   :  { %v1113_v53 = vrot.slane %v987_v51, 4  ;;  %v1027_v61 = vpop.f32.mrf.mxu1 }
 0x244   :  { %v1126_v54 = vsel %vm659_vm0, %v947_v49, %v1112_v26  ;;  %v1087_v58 = vpop.f32.mrf.mxu0 }
 0x245   :  { %v1127_v55 = vsel %vm1119_vm7, %v1113_v53, %v1114_v52  ;;  %v1117_v62 = vrot.slane %v1087_v58, 2 }
 0x246   :  { %v1128_v56 = vsel %vm1121_vm8, %v1126_v54, %v1127_v55 }
 0x247   :  { %v1138_v57 = vmul.f32 %v1128_v56, %v1586_v46 }
 0x249   :  { %1142 = vst [vmem:[#allocation2 + $0x10] sm:$0xff] %v1138_v57  ;;  %v1047_v59 = vpop.f32.mrf.mxu2 }
 0x24a   :  { %v1115_v60 = vrot.slane %v1047_v59, 6  ;;  %v1067_v43 = vpop.f32.mrf.mxu3 }
 0x24b   :  { %v1116_v0 = vrot.slane %v1067_v43, 4 }
 0x24c   :  { %v1129_v1 = vsel %vm659_vm0, %v1027_v61, %v1115_v60 }
 0x24d   :  { %v1130_v2 = vsel %vm1119_vm7, %v1116_v0, %v1117_v62 }
 0x24e   :  { %v1131_v46 = vsel %vm1121_vm8, %v1129_v1, %v1130_v2 }
 0x24f   :  { %v1139_v3 = vmul.f32 %v1131_v46, %v1633_v63 }
 0x251   :  { %1143 = vst [vmem:[#allocation2 + $0x18] sm:$0xff] %v1139_v3 }
 0x252   :  { %1154 = dma.vmem_to_hbm [thread:$0]  %s1150_s16, 512, %s1152_s19, [#allocation3]  }
 0x253   :  { %1210 = dma.done.wait [#allocation3], 512  }
 0x254   :  { %1211 = vsyncadd [#allocation3], 4294966784 }
 0x255   :  { %1159 = vsyncpa [#allocation3], 1 }

</bundles_post_ra>
